<compile_context>
chip_gen: v7x
topology: tpu7x:2x2x1
jax: 0.10.0
libtpu: 0.0.40
codegen_flags: <defaults>
</compile_context>

<pallas_src>
import functools

import jax
import jax.numpy as jnp
from jax.experimental import pallas as pl
from jax.experimental.pallas import tpu as pltpu

LN_EPS = 1e-5
_SQRT_2_OVER_PI = 0.7978845608028654
_TARGET_MATMUL_ROWS = 256      # attention: aim for ~256 rows per grid step
_FFN_ROW_TILE_TARGET = 256     # FFN: rows per grid step (512 pays off on v6e if VMEM allows)


# ----------------------------------------------------------------------------- helpers

def _pick_window_batch(n_windows, tokens_per_window, target_rows=_TARGET_MATMUL_ROWS):
    """Largest divisor wb of n_windows with wb*N <= target_rows and n_windows//wb >= 2.

    Keeping >= 2 grid steps lets the 'parallel' axis shard across both TensorCores on
    v7x; for n_windows == 1 we fall back to a single step.
    """
    cap = max(1, target_rows // max(1, tokens_per_window))
    best = 1
    for d in range(1, min(n_windows, cap) + 1):
        if n_windows % d == 0 and n_windows // d >= 2:
            best = d
    return best


def _pick_row_tile(n, cap, multiple=8):
    """Largest divisor of n <= cap that is a multiple of `multiple`; else full extent."""
    for d in range(max(1, min(n, cap)), 0, -1):
        if n % d == 0 and d % multiple == 0:
            return d
    return n   # full extent is always a legal block dim


def _vmem_limit(est_bytes):
    """Scoped VMEM limit with headroom; never below 32 MiB, capped below physical."""
    return int(min(max(2 * est_bytes + (8 << 20), 32 << 20), 112 << 20))


def _gelu_tanh(x):
    # TODO(synk): PyTorch nn.GELU defaults to exact erf; tanh approximation used here
    # (difference ~1e-3 relative).
    return 0.5 * x * (1.0 + jnp.tanh(_SQRT_2_OVER_PI * (x + 0.044715 * x * x * x)))


# ----------------------------------------------------------------------------- kernels

def _attn_kernel(x_ref, g_ref, b_ref, wqkv_ref, bqkv_ref, bias_ref, wproj_ref, bproj_ref,
                 o_ref, heads_ref, *, num_heads, head_dim, compute_dtype):
    """Fused LN1 + window MSA (+rel-pos bias) + proj + residual for WB whole windows.

    x_ref block: (WB, N, C) raw (pre-LN) tokens.  The attention scale is already folded
    into the Q columns of wqkv/bqkv.  heads_ref: (WB, N, C) f32 VMEM scratch used to
    stage per-head outputs (avoids a lane-concatenate and long live ranges).
    """
    wb, n, c = x_ref.shape
    m = wb * n

    # NOTE: reshape is sublane-aligned (free) when N % 8 == 0 (window_size 4/8); for
    # window_size=7 (N=49) it costs a VMEM relayout — see header TODO.
    x = x_ref[...].reshape(m, c).astype(jnp.float32)                     # (M, C)

    # ---- fused LayerNorm (f32 statistics) --------------------------------------------
    mu = jnp.mean(x, axis=-1, keepdims=True)
    var = jnp.mean((x - mu) * (x - mu), axis=-1, keepdims=True)
    xn = (x - mu) * jax.lax.rsqrt(var + LN_EPS) * g_ref[0] + b_ref[0]    # (M, C)

    # ---- QKV projection: one (M, C) @ (C, 3C) matmul, f32 accumulation ----------------
    qkv = jnp.dot(xn.astype(compute_dtype), wqkv_ref[...],
                  preferred_element_type=jnp.float32) + bqkv_ref[0]      # (M, 3C) f32
    qkv = qkv.reshape(wb, n, 3 * c)                                      # (WB, N, 3C)

    # ---- per-head attention, batched over the WB windows ------------------------------
    for h in range(num_heads):                 # static unroll; matmuls stay window-batched
        q = qkv[:, :, h * head_dim:(h + 1) * head_dim].astype(compute_dtype)
        k = qkv[:, :, c + h * head_dim:c + (h + 1) * head_dim].astype(compute_dtype)
        v = qkv[:, :, 2 * c + h * head_dim:2 * c + (h + 1) * head_dim].astype(compute_dtype)

        s = jnp.einsum('bnd,bmd->bnm', q, k,
                       preferred_element_type=jnp.float32)               # (WB, N, N) f32
        s = s + bias_ref[h]                                              # (N, N) bcast

        s_max = jnp.max(s, axis=-1, keepdims=True)
        p = jnp.exp(s - s_max)
        denom = jnp.sum(p, axis=-1, keepdims=True)
        p = p * pl.reciprocal(denom, approx=True)                        # softmax (f32, EUP)

        # Stage this head's output at its static lane offset (no concat).
        heads_ref[:, :, h * head_dim:(h + 1) * head_dim] = jnp.einsum(
            'bnm,bmd->bnd', p.astype(compute_dtype), v,
            preferred_element_type=jnp.float32)                          # (WB, N, hd) f32

    # ---- output projection + residual (re-read x_ref; keeps raw input out of the
    #      live set during the head loop) ------------------------------------------------
    o = heads_ref[...].reshape(m, c)
    proj = jnp.dot(o.astype(compute_dtype), wproj_ref[...],
                   preferred_element_type=jnp.float32) + bproj_ref[0]    # (M, C) f32
    res = x_ref[...].reshape(m, c).astype(jnp.float32)
    o_ref[...] = (res + proj).reshape(wb, n, c).astype(o_ref.dtype)


def _ffn_kernel(x_ref, g_ref, b_ref, w1_ref, b1_ref, w2_ref, b2_ref, o_ref,
                *, compute_dtype):
    """Fused LN2 + fc1 + GELU + fc2 + residual on a (TL, C) row tile."""
    x = x_ref[...].astype(jnp.float32)                                   # (TL, C)
    mu = jnp.mean(x, axis=-1, keepdims=True)
    var = jnp.mean((x - mu) * (x - mu), axis=-1, keepdims=True)
    xn = (x - mu) * jax.lax.rsqrt(var + LN_EPS) * g_ref[0] + b_ref[0]

    h = jnp.dot(xn.astype(compute_dtype), w1_ref[...],
                preferred_element_type=jnp.float32) + b1_ref[0]          # (TL, F) f32
    # GELU in the compute dtype: bf16 halves VALU bundle count / vreg pressure on
    # v6e/v7x; with compute_dtype=f32 this is the exact f32 polynomial.
    h = _gelu_tanh(h.astype(compute_dtype))
    out = jnp.dot(h, w2_ref[...],
                  preferred_element_type=jnp.float32) + b2_ref[0]        # (TL, C) f32
    o_ref[...] = (x + out).astype(o_ref.dtype)


# ----------------------------------------------------------------------------- wrappers

def window_attention(xw, ln_g, ln_b, wqkv, bqkv, rel_bias, wproj, bproj,
                     *, num_heads, windows_per_block, compute_dtype):
    nW, N, C = xw.shape
    head_dim = C // num_heads
    scale = head_dim ** -0.5
    wb = windows_per_block
    assert nW % wb == 0

    # Fold the attention scale into the Q columns of the QKV projection (one-time
    # parameter prep; removes the in-kernel q*scale multiply).
    col_scale = jnp.concatenate([jnp.full((C,), scale, jnp.float32),
                                 jnp.ones((2 * C,), jnp.float32)])
    wqkv = (wqkv * col_scale).astype(compute_dtype)
    bqkv = (bqkv * col_scale).astype(jnp.float32)
    wproj = wproj.astype(compute_dtype)

    in_bytes = xw.dtype.itemsize
    w_bytes = jnp.dtype(compute_dtype).itemsize
    est = (4 * wb * N * C * in_bytes                    # x + out blocks, double-buffered
           + 2 * (3 * C * C + C * C) * w_bytes          # wqkv + wproj (double-buffered)
           + 2 * num_heads * N * N * 4                  # relative-position bias
           + wb * N * C * 4                             # per-head output scratch
           + 4 * wb * N * 3 * C * 4)                    # qkv + per-head temporaries (rough)

    kernel = functools.partial(_attn_kernel, num_heads=num_heads, head_dim=head_dim,
                               compute_dtype=compute_dtype)
    return pl.pallas_call(
        kernel,
        out_shape=jax.ShapeDtypeStruct((nW, N, C), xw.dtype),
        grid=(nW // wb,),
        in_specs=[pl.BlockSpec((wb, N, C), lambda i: (i, 0, 0)),
                  pl.BlockSpec((1, C), lambda i: (0, 0)),               # ln1 gamma
                  pl.BlockSpec((1, C), lambda i: (0, 0)),               # ln1 beta
                  pl.BlockSpec((C, 3 * C), lambda i: (0, 0)),
                  pl.BlockSpec((1, 3 * C), lambda i: (0, 0)),
                  pl.BlockSpec((num_heads, N, N), lambda i: (0, 0, 0)),
                  pl.BlockSpec((C, C), lambda i: (0, 0)),
                  pl.BlockSpec((1, C), lambda i: (0, 0))],
        out_specs=pl.BlockSpec((wb, N, C), lambda i: (i, 0, 0)),
        scratch_shapes=[pltpu.VMEM((wb, N, C), jnp.float32)],
        compiler_params=pltpu.CompilerParams(
            dimension_semantics=("parallel",),
            vmem_limit_bytes=_vmem_limit(est)),
    )(xw, ln_g.reshape(1, C), ln_b.reshape(1, C),
      wqkv, bqkv.reshape(1, 3 * C), rel_bias,
      wproj, bproj.reshape(1, C))


def ffn_block(x2, ln_g, ln_b, w1, b1, w2, b2, *, row_tile, compute_dtype):
    M, C = x2.shape
    F = w1.shape[1]
    assert M % row_tile == 0

    w_bytes = jnp.dtype(compute_dtype).itemsize
    est = (4 * row_tile * C * x2.dtype.itemsize        # x + out row tiles, double-buffered
           + 2 * (C * F + F * C) * w_bytes             # w1 + w2 (double-buffered)
           + 4 * row_tile * F * 4)                     # fc1 output / GELU temporaries

    kernel = functools.partial(_ffn_kernel, compute_dtype=compute_dtype)
    return pl.pallas_call(
        kernel,
        out_shape=jax.ShapeDtypeStruct((M, C), x2.dtype),
        grid=(M // row_tile,),
        in_specs=[pl.BlockSpec((row_tile, C), lambda i: (i, 0)),
                  pl.BlockSpec((1, C), lambda i: (0, 0)),               # ln2 gamma
                  pl.BlockSpec((1, C), lambda i: (0, 0)),               # ln2 beta
                  pl.BlockSpec((C, F), lambda i: (0, 0)),
                  pl.BlockSpec((1, F), lambda i: (0, 0)),
                  pl.BlockSpec((F, C), lambda i: (0, 0)),
                  pl.BlockSpec((1, C), lambda i: (0, 0))],
        out_specs=pl.BlockSpec((row_tile, C), lambda i: (i, 0)),
        compiler_params=pltpu.CompilerParams(
            dimension_semantics=("parallel",),
            vmem_limit_bytes=_vmem_limit(est)),
    )(x2, ln_g.reshape(1, C), ln_b.reshape(1, C),
      w1.astype(compute_dtype), b1.reshape(1, F),
      w2.astype(compute_dtype), b2.reshape(1, C))


# -------------------------------------------------------------- glue (plain JAX, no hot compute)

def relative_position_bias(table, window_size, num_heads):
    # Exact replica of WindowMSA's index construction (mmcv double_step_seq form).
    Wh = Ww = window_size
    seq1 = jnp.arange(0, (2 * Ww - 1) * Wh, 2 * Ww - 1)
    seq2 = jnp.arange(0, Ww, 1)
    coords = (seq1[:, None] + seq2[None, :]).reshape(1, -1)       # (1, Wh*Ww)
    idx = coords + coords.T                                       # (N, N)
    idx = idx[:, ::-1]                                            # .flip(1)
    N = Wh * Ww
    bias = table[idx.reshape(-1)].reshape(N, N, num_heads)
    return jnp.transpose(bias, (2, 0, 1)).astype(jnp.float32)     # (nh, N, N)


def window_partition(x, H, W, ws):
    B, L, C = x.shape
    x = x.reshape(B, H // ws, ws, W // ws, ws, C)
    x = jnp.transpose(x, (0, 1, 3, 2, 4, 5))
    return x.reshape(-1, ws * ws, C)


def window_reverse(windows, B, H, W, ws):
    C = windows.shape[-1]
    x = windows.reshape(B, H // ws, W // ws, ws, ws, C)
    x = jnp.transpose(x, (0, 1, 3, 2, 4, 5))
    return x.reshape(B, H * W, C)


def swin_block(x, params, hw_shape, *, window_size, num_heads,
               compute_dtype=jnp.bfloat16):
    """SwinBlock forward (eval mode).  compute_dtype controls the MXU-input precision;
    LN statistics, softmax and all matmul accumulation stay in f32."""
    B, L, C = x.shape
    H, W = hw_shape
    assert L == H * W
    assert H % window_size == 0 and W % window_size == 0  # shift=False, no padding path
    N = window_size * window_size

    # --- attention branch (LN1 + MSA + proj + residual fused into one kernel) ---------
    xw = window_partition(x, H, W, window_size)            # raw tokens, window layout
    nW = xw.shape[0]
    rel_bias = relative_position_bias(params["rel_table"], window_size, num_heads)
    wb = _pick_window_batch(nW, N)
    aw = window_attention(xw, params["ln1_g"], params["ln1_b"],
                          params["wqkv"], params["bqkv"], rel_bias,
                          params["wproj"], params["bproj"],
                          num_heads=num_heads, windows_per_block=wb,
                          compute_dtype=compute_dtype)
    x = window_reverse(aw, B, H, W, window_size)            # attention out + residual

    # --- FFN branch (LN2 + fc1 + GELU + fc2 + residual fused, tiled over rows) --------
    x2 = x.reshape(B * L, C)
    tl = _pick_row_tile(B * L, _FFN_ROW_TILE_TARGET)
    out2 = ffn_block(x2, params["ln2_g"], params["ln2_b"],
                     params["w1"], params["b1"], params["w2"], params["b2"],
                     row_tile=tl, compute_dtype=compute_dtype)
    return out2.reshape(B, L, C)


# -------------------------------------------------------------- pure-JAX reference (for checking)

def swin_block_ref(x, params, hw_shape, *, window_size, num_heads):
    B, L, C = x.shape
    H, W = hw_shape
    hd = C // num_heads
    scale = hd ** -0.5

    def ln(v, g, b):
        mu = jnp.mean(v, axis=-1, keepdims=True)
        var = jnp.mean((v - mu) ** 2, axis=-1, keepdims=True)
        return (v - mu) / jnp.sqrt(var + LN_EPS) * g + b

    identity = x
    xn = ln(x, params["ln1_g"], params["ln1_b"])
    xw = window_partition(xn, H, W, window_size)                     # (nW, N, C)
    nW, N, _ = xw.shape
    qkv = xw @ params["wqkv"] + params["bqkv"]
    qkv = qkv.reshape(nW, N, 3, num_heads, hd).transpose(2, 0, 3, 1, 4)
    q, k, v = qkv[0] * scale, qkv[1], qkv[2]
    attn = jnp.einsum("whnd,whmd->whnm", q, k)
    attn = attn + relative_position_bias(params["rel_table"], window_size, num_heads)[None]
    attn = jax.nn.softmax(attn, axis=-1)
    o = jnp.einsum("whnm,whmd->whnd", attn, v).transpose(0, 2, 1, 3).reshape(nW, N, C)
    o = o @ params["wproj"] + params["bproj"]
    x = window_reverse(o, B, H, W, window_size) + identity

    identity = x
    xn2 = ln(x, params["ln2_g"], params["ln2_b"])
    h = _gelu_tanh(xn2 @ params["w1"] + params["b1"])
    return identity + h @ params["w2"] + params["b2"]


# ----------------------------------------------------------------------------- main

def init_params(key, C, num_heads, window_size, F):
    ks = jax.random.split(key, 12)
    n_rel = (2 * window_size - 1) * (2 * window_size - 1)
    return {
        "ln1_g": 1.0 + 0.05 * jax.random.normal(ks[0], (C,), jnp.float32),
        "ln1_b": 0.05 * jax.random.normal(ks[1], (C,), jnp.float32),
        "wqkv": 0.05 * jax.random.normal(ks[2], (C, 3 * C), jnp.float32),
        "bqkv": 0.02 * jax.random.normal(ks[3], (3 * C,), jnp.float32),
        "rel_table": 0.02 * jax.random.normal(ks[4], (n_rel, num_heads), jnp.float32),
        "wproj": 0.05 * jax.random.normal(ks[5], (C, C), jnp.float32),
        "bproj": 0.02 * jax.random.normal(ks[6], (C,), jnp.float32),
        "ln2_g": 1.0 + 0.05 * jax.random.normal(ks[7], (C,), jnp.float32),
        "ln2_b": 0.05 * jax.random.normal(ks[8], (C,), jnp.float32),
        "w1": 0.05 * jax.random.normal(ks[9], (C, F), jnp.float32),
        "b1": 0.02 * jax.random.normal(ks[10], (F,), jnp.float32),
        "w2": 0.05 * jax.random.normal(ks[11], (F, C), jnp.float32),
        "b2": jnp.zeros((C,), jnp.float32),
    }


if __name__ == "__main__":
    B, H, W = 2, 8, 8
    C, num_heads, window_size, F = 32, 4, 4, 64

    key = jax.random.PRNGKey(0)
    kx, kp = jax.random.split(key)
    x = jax.random.normal(kx, (B, H * W, C), jnp.float32)
    params = init_params(kp, C, num_heads, window_size, F)

    ref = swin_block_ref(x, params, (H, W), window_size=window_size, num_heads=num_heads)

    # Default path: bf16 MXU inputs, f32 accumulation / LN stats / softmax.
    out = swin_block(x, params, (H, W), window_size=window_size, num_heads=num_heads)
    out = jax.block_until_ready(out)
    assert out.shape == (B, H * W, C)
    assert jnp.allclose(out, ref, rtol=5e-2, atol=5e-2), \
        float(jnp.max(jnp.abs(out - ref)))

    # f32 compute path for a tighter numerical check (approx-reciprocal softmax only
    # source of deviation from the reference).
    out_f32 = swin_block(x, params, (H, W), window_size=window_size,
                         num_heads=num_heads, compute_dtype=jnp.float32)
    out_f32 = jax.block_until_ready(out_f32)
    assert jnp.allclose(out_f32, ref, rtol=2e-3, atol=2e-3), \
        float(jnp.max(jnp.abs(out_f32 - ref)))

    print("KERNEL_OK")
</pallas_src>

<mosaic_0001>
module attributes {stable_mosaic.version = 11 : i64} {
  func.func @_attn_kernel(%arg0: i32, %arg1: memref<4x16x32xf32, #tpu.memory_space<vmem>>, %arg2: memref<1x32xf32, #tpu.memory_space<vmem>>, %arg3: memref<1x32xf32, #tpu.memory_space<vmem>>, %arg4: memref<32x96xbf16, #tpu.memory_space<vmem>>, %arg5: memref<1x96xf32, #tpu.memory_space<vmem>>, %arg6: memref<4x16x16xf32, #tpu.memory_space<vmem>>, %arg7: memref<32x32xbf16, #tpu.memory_space<vmem>>, %arg8: memref<1x32xf32, #tpu.memory_space<vmem>>, %arg9: memref<4x16x32xf32, #tpu.memory_space<vmem>>, %arg10: memref<4x16x32xf32, #tpu.memory_space<vmem>>) attributes {dimension_semantics = [#tpu.dimension_semantics<parallel>], iteration_bounds = array<i64: 2>, scalar_prefetch = 0 : i64, scratch_operands = 1 : i64, tpu.core_type = #tpu.core_type<tc>, window_params = [{transform_indices = @transform_0, window_bounds = array<i64: 4, 16, 32>}, {pipeline_mode = #tpu.pipeline_mode<synchronous>, transform_indices = @transform_1, window_bounds = array<i64: 1, 32>}, {pipeline_mode = #tpu.pipeline_mode<synchronous>, transform_indices = @transform_2, window_bounds = array<i64: 1, 32>}, {pipeline_mode = #tpu.pipeline_mode<synchronous>, transform_indices = @transform_3, window_bounds = array<i64: 32, 96>}, {pipeline_mode = #tpu.pipeline_mode<synchronous>, transform_indices = @transform_4, window_bounds = array<i64: 1, 96>}, {pipeline_mode = #tpu.pipeline_mode<synchronous>, transform_indices = @transform_5, window_bounds = array<i64: 4, 16, 16>}, {pipeline_mode = #tpu.pipeline_mode<synchronous>, transform_indices = @transform_6, window_bounds = array<i64: 32, 32>}, {pipeline_mode = #tpu.pipeline_mode<synchronous>, transform_indices = @transform_7, window_bounds = array<i64: 1, 32>}, {transform_indices = @transform_8, window_bounds = array<i64: 4, 16, 32>}]} {
    %c0 = arith.constant 0 : index
    %c0_0 = arith.constant 0 : index
    %c0_1 = arith.constant 0 : index
    %0 = vector.load %arg1[%c0, %c0_0, %c0_1] : memref<4x16x32xf32, #tpu.memory_space<vmem>>, vector<4x16x32xf32>
    %1 = vector.shape_cast %0 : vector<4x16x32xf32> to vector<64x32xf32>
    %cst = arith.constant dense<0.000000e+00> : vector<64xf32>
    %2 = vector.multi_reduction <add>, %1, %cst [1] : vector<64x32xf32> to vector<64xf32>
    %3 = vector.shape_cast %2 : vector<64xf32> to vector<64x1xf32>
    %cst_2 = arith.constant 3.200000e+01 : f32
    %4 = vector.broadcast %cst_2 : f32 to vector<64x1xf32>
    %5 = arith.divf %3, %4 : vector<64x1xf32>
    %6 = vector.broadcast %5 : vector<64x1xf32> to vector<64x32xf32>
    %7 = arith.subf %1, %6 : vector<64x32xf32>
    %8 = vector.broadcast %5 : vector<64x1xf32> to vector<64x32xf32>
    %9 = arith.subf %1, %8 : vector<64x32xf32>
    %10 = arith.mulf %7, %9 : vector<64x32xf32>
    %cst_3 = arith.constant dense<0.000000e+00> : vector<64xf32>
    %11 = vector.multi_reduction <add>, %10, %cst_3 [1] : vector<64x32xf32> to vector<64xf32>
    %12 = vector.shape_cast %11 : vector<64xf32> to vector<64x1xf32>
    %cst_4 = arith.constant 3.200000e+01 : f32
    %13 = vector.broadcast %cst_4 : f32 to vector<64x1xf32>
    %14 = arith.divf %12, %13 : vector<64x1xf32>
    %15 = vector.broadcast %5 : vector<64x1xf32> to vector<64x32xf32>
    %16 = arith.subf %1, %15 : vector<64x32xf32>
    %cst_5 = arith.constant 9.99999974E-6 : f32
    %17 = vector.broadcast %cst_5 : f32 to vector<64x1xf32>
    %18 = arith.addf %14, %17 : vector<64x1xf32>
    %19 = math.rsqrt %18 : vector<64x1xf32>
    %20 = vector.broadcast %19 : vector<64x1xf32> to vector<64x32xf32>
    %21 = arith.mulf %16, %20 : vector<64x32xf32>
    %c0_6 = arith.constant 0 : index
    %c0_7 = arith.constant 0 : index
    %22 = vector.load %arg2[%c0_6, %c0_7] : memref<1x32xf32, #tpu.memory_space<vmem>>, vector<1x32xf32>
    %23 = vector.shape_cast %22 : vector<1x32xf32> to vector<32xf32>
    %24 = vector.shape_cast %23 : vector<32xf32> to vector<1x32xf32>
    %25 = vector.broadcast %24 : vector<1x32xf32> to vector<64x32xf32>
    %26 = arith.mulf %21, %25 : vector<64x32xf32>
    %c0_8 = arith.constant 0 : index
    %c0_9 = arith.constant 0 : index
    %27 = vector.load %arg3[%c0_8, %c0_9] : memref<1x32xf32, #tpu.memory_space<vmem>>, vector<1x32xf32>
    %28 = vector.shape_cast %27 : vector<1x32xf32> to vector<32xf32>
    %29 = vector.shape_cast %28 : vector<32xf32> to vector<1x32xf32>
    %30 = vector.broadcast %29 : vector<1x32xf32> to vector<64x32xf32>
    %31 = arith.addf %26, %30 : vector<64x32xf32>
    %32 = arith.truncf %31 : vector<64x32xf32> to vector<64x32xbf16>
    %c0_10 = arith.constant 0 : index
    %c0_11 = arith.constant 0 : index
    %33 = vector.load %arg4[%c0_10, %c0_11] : memref<32x96xbf16, #tpu.memory_space<vmem>>, vector<32x96xbf16>
    %cst_12 = arith.constant dense<0.000000e+00> : vector<64x96xf32>
    %34 = tpu.matmul %32, %33, %cst_12 {dimension_numbers = #tpu.dot_dimension_numbers<[1], [0], [0], [1], [0, 0, 1, 1], [], []>} : vector<64x32xbf16>, vector<32x96xbf16>, vector<64x96xf32> -> vector<64x96xf32>
    %c0_13 = arith.constant 0 : index
    %c0_14 = arith.constant 0 : index
    %35 = vector.load %arg5[%c0_13, %c0_14] : memref<1x96xf32, #tpu.memory_space<vmem>>, vector<1x96xf32>
    %36 = vector.shape_cast %35 : vector<1x96xf32> to vector<96xf32>
    %37 = vector.shape_cast %36 : vector<96xf32> to vector<1x96xf32>
    %38 = vector.broadcast %37 : vector<1x96xf32> to vector<64x96xf32>
    %39 = arith.addf %34, %38 : vector<64x96xf32>
    %40 = vector.shape_cast %39 : vector<64x96xf32> to vector<4x16x96xf32>
    %41 = vector.extract_strided_slice %40 {offsets = [0, 0, 0], sizes = [4, 16, 8], strides = [1, 1, 1]} : vector<4x16x96xf32> to vector<4x16x8xf32>
    %42 = arith.truncf %41 : vector<4x16x8xf32> to vector<4x16x8xbf16>
    %43 = vector.extract_strided_slice %40 {offsets = [0, 0, 32], sizes = [4, 16, 8], strides = [1, 1, 1]} : vector<4x16x96xf32> to vector<4x16x8xf32>
    %44 = arith.truncf %43 : vector<4x16x8xf32> to vector<4x16x8xbf16>
    %45 = vector.extract_strided_slice %40 {offsets = [0, 0, 64], sizes = [4, 16, 8], strides = [1, 1, 1]} : vector<4x16x96xf32> to vector<4x16x8xf32>
    %46 = arith.truncf %45 : vector<4x16x8xf32> to vector<4x16x8xbf16>
    "tpu.trace_start"() <{level = 10 : i32, message = "bnd,bmd->bnm"}> : () -> ()
    %cst_15 = arith.constant dense<0.000000e+00> : vector<4x16x16xf32>
    %47 = tpu.matmul %42, %44, %cst_15 {dimension_numbers = #tpu.dot_dimension_numbers<[2], [2], [1], [1], [0, 0, 0, 1, 1, 1], [0], [0]>} : vector<4x16x8xbf16>, vector<4x16x8xbf16>, vector<4x16x16xf32> -> vector<4x16x16xf32>
    "tpu.trace_stop"() : () -> ()
    %c0_16 = arith.constant 0 : index
    %c0_17 = arith.constant 0 : index
    %c0_18 = arith.constant 0 : index
    %48 = vector.load %arg6[%c0_16, %c0_17, %c0_18] : memref<4x16x16xf32, #tpu.memory_space<vmem>>, vector<1x16x16xf32>
    %49 = vector.shape_cast %48 : vector<1x16x16xf32> to vector<16x16xf32>
    %50 = vector.shape_cast %49 : vector<16x16xf32> to vector<1x16x16xf32>
    %51 = vector.broadcast %50 : vector<1x16x16xf32> to vector<4x16x16xf32>
    %52 = arith.addf %47, %51 : vector<4x16x16xf32>
    %cst_19 = arith.constant dense<0xFF800000> : vector<4x16xf32>
    %53 = vector.multi_reduction <maximumf>, %52, %cst_19 [2] : vector<4x16x16xf32> to vector<4x16xf32>
    %54 = vector.shape_cast %53 : vector<4x16xf32> to vector<4x16x1xf32>
    %55 = vector.broadcast %54 : vector<4x16x1xf32> to vector<4x16x16xf32>
    %56 = arith.subf %52, %55 : vector<4x16x16xf32>
    %57 = math.exp %56 : vector<4x16x16xf32>
    %cst_20 = arith.constant dense<0.000000e+00> : vector<4x16xf32>
    %58 = vector.multi_reduction <add>, %57, %cst_20 [2] : vector<4x16x16xf32> to vector<4x16xf32>
    %59 = vector.shape_cast %58 : vector<4x16xf32> to vector<4x16x1xf32>
    %60 = tpu.reciprocal %59 {approx = true} : vector<4x16x1xf32> -> vector<4x16x1xf32>
    %61 = vector.broadcast %60 : vector<4x16x1xf32> to vector<4x16x16xf32>
    %62 = arith.mulf %57, %61 : vector<4x16x16xf32>
    %63 = arith.truncf %62 : vector<4x16x16xf32> to vector<4x16x16xbf16>
    "tpu.trace_start"() <{level = 10 : i32, message = "bnm,bmd->bnd"}> : () -> ()
    %cst_21 = arith.constant dense<0.000000e+00> : vector<4x16x8xf32>
    %64 = tpu.matmul %63, %46, %cst_21 {dimension_numbers = #tpu.dot_dimension_numbers<[2], [1], [1], [2], [0, 0, 0, 1, 1, 2], [0], [0]>} : vector<4x16x16xbf16>, vector<4x16x8xbf16>, vector<4x16x8xf32> -> vector<4x16x8xf32>
    "tpu.trace_stop"() : () -> ()
    %c0_22 = arith.constant 0 : index
    %c0_23 = arith.constant 0 : index
    %c0_24 = arith.constant 0 : index
    %65 = vector.load %arg10[%c0_22, %c0_23, %c0_24] : memref<4x16x32xf32, #tpu.memory_space<vmem>>, vector<4x16x8xf32>
    tpu.vector_store %arg10[%c0_22, %c0_23, %c0_24], %64 {strides = array<i32>} : memref<4x16x32xf32, #tpu.memory_space<vmem>>, vector<4x16x8xf32>,
    %66 = vector.extract_strided_slice %40 {offsets = [0, 0, 8], sizes = [4, 16, 8], strides = [1, 1, 1]} : vector<4x16x96xf32> to vector<4x16x8xf32>
    %67 = arith.truncf %66 : vector<4x16x8xf32> to vector<4x16x8xbf16>
    %68 = vector.extract_strided_slice %40 {offsets = [0, 0, 40], sizes = [4, 16, 8], strides = [1, 1, 1]} : vector<4x16x96xf32> to vector<4x16x8xf32>
    %69 = arith.truncf %68 : vector<4x16x8xf32> to vector<4x16x8xbf16>
    %70 = vector.extract_strided_slice %40 {offsets = [0, 0, 72], sizes = [4, 16, 8], strides = [1, 1, 1]} : vector<4x16x96xf32> to vector<4x16x8xf32>
    %71 = arith.truncf %70 : vector<4x16x8xf32> to vector<4x16x8xbf16>
    "tpu.trace_start"() <{level = 10 : i32, message = "bnd,bmd->bnm"}> : () -> ()
    %cst_25 = arith.constant dense<0.000000e+00> : vector<4x16x16xf32>
    %72 = tpu.matmul %67, %69, %cst_25 {dimension_numbers = #tpu.dot_dimension_numbers<[2], [2], [1], [1], [0, 0, 0, 1, 1, 1], [0], [0]>} : vector<4x16x8xbf16>, vector<4x16x8xbf16>, vector<4x16x16xf32> -> vector<4x16x16xf32>
    "tpu.trace_stop"() : () -> ()
    %c1 = arith.constant 1 : index
    %c0_26 = arith.constant 0 : index
    %c0_27 = arith.constant 0 : index
    %73 = vector.load %arg6[%c1, %c0_26, %c0_27] : memref<4x16x16xf32, #tpu.memory_space<vmem>>, vector<1x16x16xf32>
    %74 = vector.shape_cast %73 : vector<1x16x16xf32> to vector<16x16xf32>
    %75 = vector.shape_cast %74 : vector<16x16xf32> to vector<1x16x16xf32>
    %76 = vector.broadcast %75 : vector<1x16x16xf32> to vector<4x16x16xf32>
    %77 = arith.addf %72, %76 : vector<4x16x16xf32>
    %cst_28 = arith.constant dense<0xFF800000> : vector<4x16xf32>
    %78 = vector.multi_reduction <maximumf>, %77, %cst_28 [2] : vector<4x16x16xf32> to vector<4x16xf32>
    %79 = vector.shape_cast %78 : vector<4x16xf32> to vector<4x16x1xf32>
    %80 = vector.broadcast %79 : vector<4x16x1xf32> to vector<4x16x16xf32>
    %81 = arith.subf %77, %80 : vector<4x16x16xf32>
    %82 = math.exp %81 : vector<4x16x16xf32>
    %cst_29 = arith.constant dense<0.000000e+00> : vector<4x16xf32>
    %83 = vector.multi_reduction <add>, %82, %cst_29 [2] : vector<4x16x16xf32> to vector<4x16xf32>
    %84 = vector.shape_cast %83 : vector<4x16xf32> to vector<4x16x1xf32>
    %85 = tpu.reciprocal %84 {approx = true} : vector<4x16x1xf32> -> vector<4x16x1xf32>
    %86 = vector.broadcast %85 : vector<4x16x1xf32> to vector<4x16x16xf32>
    %87 = arith.mulf %82, %86 : vector<4x16x16xf32>
    %88 = arith.truncf %87 : vector<4x16x16xf32> to vector<4x16x16xbf16>
    "tpu.trace_start"() <{level = 10 : i32, message = "bnm,bmd->bnd"}> : () -> ()
    %cst_30 = arith.constant dense<0.000000e+00> : vector<4x16x8xf32>
    %89 = tpu.matmul %88, %71, %cst_30 {dimension_numbers = #tpu.dot_dimension_numbers<[2], [1], [1], [2], [0, 0, 0, 1, 1, 2], [0], [0]>} : vector<4x16x16xbf16>, vector<4x16x8xbf16>, vector<4x16x8xf32> -> vector<4x16x8xf32>
    "tpu.trace_stop"() : () -> ()
    %c0_31 = arith.constant 0 : index
    %c0_32 = arith.constant 0 : index
    %c8 = arith.constant 8 : index
    %90 = vector.load %arg10[%c0_31, %c0_32, %c8] : memref<4x16x32xf32, #tpu.memory_space<vmem>>, vector<4x16x8xf32>
    tpu.vector_store %arg10[%c0_31, %c0_32, %c8], %89 {strides = array<i32>} : memref<4x16x32xf32, #tpu.memory_space<vmem>>, vector<4x16x8xf32>,
    %91 = vector.extract_strided_slice %40 {offsets = [0, 0, 16], sizes = [4, 16, 8], strides = [1, 1, 1]} : vector<4x16x96xf32> to vector<4x16x8xf32>
    %92 = arith.truncf %91 : vector<4x16x8xf32> to vector<4x16x8xbf16>
    %93 = vector.extract_strided_slice %40 {offsets = [0, 0, 48], sizes = [4, 16, 8], strides = [1, 1, 1]} : vector<4x16x96xf32> to vector<4x16x8xf32>
    %94 = arith.truncf %93 : vector<4x16x8xf32> to vector<4x16x8xbf16>
    %95 = vector.extract_strided_slice %40 {offsets = [0, 0, 80], sizes = [4, 16, 8], strides = [1, 1, 1]} : vector<4x16x96xf32> to vector<4x16x8xf32>
    %96 = arith.truncf %95 : vector<4x16x8xf32> to vector<4x16x8xbf16>
    "tpu.trace_start"() <{level = 10 : i32, message = "bnd,bmd->bnm"}> : () -> ()
    %cst_33 = arith.constant dense<0.000000e+00> : vector<4x16x16xf32>
    %97 = tpu.matmul %92, %94, %cst_33 {dimension_numbers = #tpu.dot_dimension_numbers<[2], [2], [1], [1], [0, 0, 0, 1, 1, 1], [0], [0]>} : vector<4x16x8xbf16>, vector<4x16x8xbf16>, vector<4x16x16xf32> -> vector<4x16x16xf32>
    "tpu.trace_stop"() : () -> ()
    %c2 = arith.constant 2 : index
    %c0_34 = arith.constant 0 : index
    %c0_35 = arith.constant 0 : index
    %98 = vector.load %arg6[%c2, %c0_34, %c0_35] : memref<4x16x16xf32, #tpu.memory_space<vmem>>, vector<1x16x16xf32>
    %99 = vector.shape_cast %98 : vector<1x16x16xf32> to vector<16x16xf32>
    %100 = vector.shape_cast %99 : vector<16x16xf32> to vector<1x16x16xf32>
    %101 = vector.broadcast %100 : vector<1x16x16xf32> to vector<4x16x16xf32>
    %102 = arith.addf %97, %101 : vector<4x16x16xf32>
    %cst_36 = arith.constant dense<0xFF800000> : vector<4x16xf32>
    %103 = vector.multi_reduction <maximumf>, %102, %cst_36 [2] : vector<4x16x16xf32> to vector<4x16xf32>
    %104 = vector.shape_cast %103 : vector<4x16xf32> to vector<4x16x1xf32>
    %105 = vector.broadcast %104 : vector<4x16x1xf32> to vector<4x16x16xf32>
    %106 = arith.subf %102, %105 : vector<4x16x16xf32>
    %107 = math.exp %106 : vector<4x16x16xf32>
    %cst_37 = arith.constant dense<0.000000e+00> : vector<4x16xf32>
    %108 = vector.multi_reduction <add>, %107, %cst_37 [2] : vector<4x16x16xf32> to vector<4x16xf32>
    %109 = vector.shape_cast %108 : vector<4x16xf32> to vector<4x16x1xf32>
    %110 = tpu.reciprocal %109 {approx = true} : vector<4x16x1xf32> -> vector<4x16x1xf32>
    %111 = vector.broadcast %110 : vector<4x16x1xf32> to vector<4x16x16xf32>
    %112 = arith.mulf %107, %111 : vector<4x16x16xf32>
    %113 = arith.truncf %112 : vector<4x16x16xf32> to vector<4x16x16xbf16>
    "tpu.trace_start"() <{level = 10 : i32, message = "bnm,bmd->bnd"}> : () -> ()
    %cst_38 = arith.constant dense<0.000000e+00> : vector<4x16x8xf32>
    %114 = tpu.matmul %113, %96, %cst_38 {dimension_numbers = #tpu.dot_dimension_numbers<[2], [1], [1], [2], [0, 0, 0, 1, 1, 2], [0], [0]>} : vector<4x16x16xbf16>, vector<4x16x8xbf16>, vector<4x16x8xf32> -> vector<4x16x8xf32>
    "tpu.trace_stop"() : () -> ()
    %c0_39 = arith.constant 0 : index
    %c0_40 = arith.constant 0 : index
    %c16 = arith.constant 16 : index
    %115 = vector.load %arg10[%c0_39, %c0_40, %c16] : memref<4x16x32xf32, #tpu.memory_space<vmem>>, vector<4x16x8xf32>
    tpu.vector_store %arg10[%c0_39, %c0_40, %c16], %114 {strides = array<i32>} : memref<4x16x32xf32, #tpu.memory_space<vmem>>, vector<4x16x8xf32>,
    %116 = vector.extract_strided_slice %40 {offsets = [0, 0, 24], sizes = [4, 16, 8], strides = [1, 1, 1]} : vector<4x16x96xf32> to vector<4x16x8xf32>
    %117 = arith.truncf %116 : vector<4x16x8xf32> to vector<4x16x8xbf16>
    %118 = vector.extract_strided_slice %40 {offsets = [0, 0, 56], sizes = [4, 16, 8], strides = [1, 1, 1]} : vector<4x16x96xf32> to vector<4x16x8xf32>
    %119 = arith.truncf %118 : vector<4x16x8xf32> to vector<4x16x8xbf16>
    %120 = vector.extract_strided_slice %40 {offsets = [0, 0, 88], sizes = [4, 16, 8], strides = [1, 1, 1]} : vector<4x16x96xf32> to vector<4x16x8xf32>
    %121 = arith.truncf %120 : vector<4x16x8xf32> to vector<4x16x8xbf16>
    "tpu.trace_start"() <{level = 10 : i32, message = "bnd,bmd->bnm"}> : () -> ()
    %cst_41 = arith.constant dense<0.000000e+00> : vector<4x16x16xf32>
    %122 = tpu.matmul %117, %119, %cst_41 {dimension_numbers = #tpu.dot_dimension_numbers<[2], [2], [1], [1], [0, 0, 0, 1, 1, 1], [0], [0]>} : vector<4x16x8xbf16>, vector<4x16x8xbf16>, vector<4x16x16xf32> -> vector<4x16x16xf32>
    "tpu.trace_stop"() : () -> ()
    %c3 = arith.constant 3 : index
    %c0_42 = arith.constant 0 : index
    %c0_43 = arith.constant 0 : index
    %123 = vector.load %arg6[%c3, %c0_42, %c0_43] : memref<4x16x16xf32, #tpu.memory_space<vmem>>, vector<1x16x16xf32>
    %124 = vector.shape_cast %123 : vector<1x16x16xf32> to vector<16x16xf32>
    %125 = vector.shape_cast %124 : vector<16x16xf32> to vector<1x16x16xf32>
    %126 = vector.broadcast %125 : vector<1x16x16xf32> to vector<4x16x16xf32>
    %127 = arith.addf %122, %126 : vector<4x16x16xf32>
    %cst_44 = arith.constant dense<0xFF800000> : vector<4x16xf32>
    %128 = vector.multi_reduction <maximumf>, %127, %cst_44 [2] : vector<4x16x16xf32> to vector<4x16xf32>
    %129 = vector.shape_cast %128 : vector<4x16xf32> to vector<4x16x1xf32>
    %130 = vector.broadcast %129 : vector<4x16x1xf32> to vector<4x16x16xf32>
    %131 = arith.subf %127, %130 : vector<4x16x16xf32>
    %132 = math.exp %131 : vector<4x16x16xf32>
    %cst_45 = arith.constant dense<0.000000e+00> : vector<4x16xf32>
    %133 = vector.multi_reduction <add>, %132, %cst_45 [2] : vector<4x16x16xf32> to vector<4x16xf32>
    %134 = vector.shape_cast %133 : vector<4x16xf32> to vector<4x16x1xf32>
    %135 = tpu.reciprocal %134 {approx = true} : vector<4x16x1xf32> -> vector<4x16x1xf32>
    %136 = vector.broadcast %135 : vector<4x16x1xf32> to vector<4x16x16xf32>
    %137 = arith.mulf %132, %136 : vector<4x16x16xf32>
    %138 = arith.truncf %137 : vector<4x16x16xf32> to vector<4x16x16xbf16>
    "tpu.trace_start"() <{level = 10 : i32, message = "bnm,bmd->bnd"}> : () -> ()
    %cst_46 = arith.constant dense<0.000000e+00> : vector<4x16x8xf32>
    %139 = tpu.matmul %138, %121, %cst_46 {dimension_numbers = #tpu.dot_dimension_numbers<[2], [1], [1], [2], [0, 0, 0, 1, 1, 2], [0], [0]>} : vector<4x16x16xbf16>, vector<4x16x8xbf16>, vector<4x16x8xf32> -> vector<4x16x8xf32>
    "tpu.trace_stop"() : () -> ()
    %c0_47 = arith.constant 0 : index
    %c0_48 = arith.constant 0 : index
    %c24 = arith.constant 24 : index
    %140 = vector.load %arg10[%c0_47, %c0_48, %c24] : memref<4x16x32xf32, #tpu.memory_space<vmem>>, vector<4x16x8xf32>
    tpu.vector_store %arg10[%c0_47, %c0_48, %c24], %139 {strides = array<i32>} : memref<4x16x32xf32, #tpu.memory_space<vmem>>, vector<4x16x8xf32>,
    %c0_49 = arith.constant 0 : index
    %c0_50 = arith.constant 0 : index
    %c0_51 = arith.constant 0 : index
    %141 = vector.load %arg10[%c0_49, %c0_50, %c0_51] : memref<4x16x32xf32, #tpu.memory_space<vmem>>, vector<4x16x32xf32>
    %142 = vector.shape_cast %141 : vector<4x16x32xf32> to vector<64x32xf32>
    %143 = arith.truncf %142 : vector<64x32xf32> to vector<64x32xbf16>
    %c0_52 = arith.constant 0 : index
    %c0_53 = arith.constant 0 : index
    %144 = vector.load %arg7[%c0_52, %c0_53] : memref<32x32xbf16, #tpu.memory_space<vmem>>, vector<32x32xbf16>
    %cst_54 = arith.constant dense<0.000000e+00> : vector<64x32xf32>
    %145 = tpu.matmul %143, %144, %cst_54 {dimension_numbers = #tpu.dot_dimension_numbers<[1], [0], [0], [1], [0, 0, 1, 1], [], []>} : vector<64x32xbf16>, vector<32x32xbf16>, vector<64x32xf32> -> vector<64x32xf32>
    %c0_55 = arith.constant 0 : index
    %c0_56 = arith.constant 0 : index
    %146 = vector.load %arg8[%c0_55, %c0_56] : memref<1x32xf32, #tpu.memory_space<vmem>>, vector<1x32xf32>
    %147 = vector.shape_cast %146 : vector<1x32xf32> to vector<32xf32>
    %148 = vector.shape_cast %147 : vector<32xf32> to vector<1x32xf32>
    %149 = vector.broadcast %148 : vector<1x32xf32> to vector<64x32xf32>
    %150 = arith.addf %145, %149 : vector<64x32xf32>
    %c0_57 = arith.constant 0 : index
    %c0_58 = arith.constant 0 : index
    %c0_59 = arith.constant 0 : index
    %151 = vector.load %arg1[%c0_57, %c0_58, %c0_59] : memref<4x16x32xf32, #tpu.memory_space<vmem>>, vector<4x16x32xf32>
    %152 = vector.shape_cast %151 : vector<4x16x32xf32> to vector<64x32xf32>
    %153 = arith.addf %152, %150 : vector<64x32xf32>
    %154 = vector.shape_cast %153 : vector<64x32xf32> to vector<4x16x32xf32>
    %c0_60 = arith.constant 0 : index
    %c0_61 = arith.constant 0 : index
    %c0_62 = arith.constant 0 : index
    %155 = vector.load %arg9[%c0_60, %c0_61, %c0_62] : memref<4x16x32xf32, #tpu.memory_space<vmem>>, vector<4x16x32xf32>
    tpu.vector_store %arg9[%c0_60, %c0_61, %c0_62], %154 {strides = array<i32>} : memref<4x16x32xf32, #tpu.memory_space<vmem>>, vector<4x16x32xf32>,
    return
  }
  func.func @transform_0(%arg0: i32) -> (i32, i32, i32) {
    %c0_i32 = arith.constant 0 : i32
    %c0_i32_0 = arith.constant 0 : i32
    %c0_i32_1 = arith.constant 0 : i32
    return %arg0, %c0_i32, %c0_i32_0 : i32, i32, i32
  }
  func.func @transform_1(%arg0: i32) -> (i32, i32) {
    %c0_i32 = arith.constant 0 : i32
    %c0_i32_0 = arith.constant 0 : i32
    %c0_i32_1 = arith.constant 0 : i32
    return %c0_i32, %c0_i32_0 : i32, i32
  }
  func.func @transform_2(%arg0: i32) -> (i32, i32) {
    %c0_i32 = arith.constant 0 : i32
    %c0_i32_0 = arith.constant 0 : i32
    %c0_i32_1 = arith.constant 0 : i32
    return %c0_i32, %c0_i32_0 : i32, i32
  }
  func.func @transform_3(%arg0: i32) -> (i32, i32) {
    %c0_i32 = arith.constant 0 : i32
    %c0_i32_0 = arith.constant 0 : i32
    %c0_i32_1 = arith.constant 0 : i32
    return %c0_i32, %c0_i32_0 : i32, i32
  }
  func.func @transform_4(%arg0: i32) -> (i32, i32) {
    %c0_i32 = arith.constant 0 : i32
    %c0_i32_0 = arith.constant 0 : i32
    %c0_i32_1 = arith.constant 0 : i32
    return %c0_i32, %c0_i32_0 : i32, i32
  }
  func.func @transform_5(%arg0: i32) -> (i32, i32, i32) {
    %c0_i32 = arith.constant 0 : i32
    %c0_i32_0 = arith.constant 0 : i32
    %c0_i32_1 = arith.constant 0 : i32
    %c0_i32_2 = arith.constant 0 : i32
    return %c0_i32, %c0_i32_0, %c0_i32_1 : i32, i32, i32
  }
  func.func @transform_6(%arg0: i32) -> (i32, i32) {
    %c0_i32 = arith.constant 0 : i32
    %c0_i32_0 = arith.constant 0 : i32
    %c0_i32_1 = arith.constant 0 : i32
    return %c0_i32, %c0_i32_0 : i32, i32
  }
  func.func @transform_7(%arg0: i32) -> (i32, i32) {
    %c0_i32 = arith.constant 0 : i32
    %c0_i32_0 = arith.constant 0 : i32
    %c0_i32_1 = arith.constant 0 : i32
    return %c0_i32, %c0_i32_0 : i32, i32
  }
  func.func @transform_8(%arg0: i32) -> (i32, i32, i32) {
    %c0_i32 = arith.constant 0 : i32
    %c0_i32_0 = arith.constant 0 : i32
    %c0_i32_1 = arith.constant 0 : i32
    return %arg0, %c0_i32, %c0_i32_0 : i32, i32, i32
  }
}

</mosaic_0001>

<bundles_post_ra>
// kernel: tpu_custom_call.1
= control target key start
LH: loop header
LB: loop body
LE: loop exit
PB: predicated region body
PF: predicated region fallthrough
CT: control target
= control target key end

     0   :  { %13 = vsyncpa [#allocation4], 0  ;;  %s4585_s0 = inlined_call_operand.hbm [shape: f32[8,16,32], index: 0, kind: input, shape index: {}]   ;;  %s4586_s1 = inlined_call_operand.vmem [shape: f32[1,32], index: 1, kind: input, shape index: {}]   ;;  %s4587_s2 = inlined_call_operand.vmem [shape: f32[1,32], index: 2, kind: input, shape index: {}]   ;;  %s4588_s3 = inlined_call_operand.hbm [shape: bf16[32,96], index: 3, kind: input, shape index: {}]   ;;  %s4589_s4 = inlined_call_operand.vmem [shape: f32[1,96], index: 4, kind: input, shape index: {}]   ;;  %s4590_s5 = inlined_call_operand.hbm [shape: f32[4,16,16], index: 5, kind: input, shape index: {}]   ;;  %s4591_s6 = inlined_call_operand.vmem [shape: bf16[32,32], index: 6, kind: input, shape index: {}]   ;;  %s4592_s7 = inlined_call_operand.vmem [shape: f32[1,32], index: 7, kind: input, shape index: {}]   ;;  %s4593_s8 = inlined_call_operand.hbm [shape: f32[8,16,32], index: 8, kind: output, shape index: {}]  }
   0x1   :  { %15 = vsyncpa [#allocation4 + $0x1], 0 }
   0x2   :  { %16 = vsyncpa [#allocation7], 0 }
   0x3   :  { %17 = vsyncpa [#allocation5], 0 }
   0x4   :  { %19 = vsyncpa [#allocation5 + $0x1], 0  ;;  %s3760_s27 = smov 0   ;;  %s3762_s28 = smov 0  }
   0x5   :  { %s3764_s29 = smov 0   ;;  %s3766_s30 = smov 0  }
   0x6 LB: > { %s3781_s9 = sadd.s32 4294967295, %s3688_s30   ;;  %s2928_s10 = sadd.s32 4294967294, %s3688_s30   ;;  %s3688_s30 = sphi %s3766_s30, %s4617_s30   ;;  %s3684_s29 = sphi %s3764_s29, %s4616_s29   ;;  %s3680_s28 = sphi %s3762_s28, %s4615_s28   ;;  %s3676_s27 = sphi %s3760_s27, %s4614_s27  }
   0x7   : > { %p45_p0 = scmp.ne.s32.totalorder %s3680_s28, %s3676_s27  ;;  %p4594_p1 = scmp.eq.s32.totalorder %s3781_s9, 0 }
   0x8   : > { %p222_p3 = scmp.eq.s32.totalorder %s2928_s10, 1  ;;  %p2929_p5 = scmp.ge.s32.totalorder %s3688_s30, 1 }
   0x9   : > { %p3790_p4 = por %p4594_p1, %p45_p0  ;;  %p229_p7 = scmp.lt.s32.totalorder %s3688_s30, 3 }
   0xa   : > { %p3795_p6 = por %p222_p3, %p45_p0  ;;  %s3690_s14 = smov [#allocation6]  }
   0xb   : > { %s4599_s11 = scalar_select %p3790_p4, 1, 0 }
   0xc   : > { %s4600_s12 = scalar_select %p3795_p6, 1, 0 }
   0xd   : > { %p3800_p8 = pnand %p2929_p5, %p229_p7  ;;  %s247_s15 = sshll.u32 %s3690_s14, 4  ;;  %s3804_s15 = int_to_ptr.vmem [resolvable:$true] %s247_s15 }
   0xe   : > { %s3691_s17 = smov [#allocation8]   ;;  %s3532_s21 = scalar_lea.hbm %s4588_s3, 256 }
   0xf   : > { %p3308_p9 = pneg %p3800_p8  ;;  %s263_s18 = sshll.u32 %s3691_s17, 4  ;;  %s3815_s18 = int_to_ptr.vmem [resolvable:$true] %s263_s18 }
  0x10   : > { %p3533_p12 = scmp.ne.s32.totalorder %s4588_s3, %s3532_s21  ;;  %p3539_p5 = scmp.lt.u32.totalorder %s3532_s21, %s4588_s3 }
  0x11   : > { %p3811_p11 = pnand %p3308_p9, %p4594_p1 }
  0x13   : > { %p3534_p13 = pneg %p3811_p11 }
  0x15   : > { %p3535_p0 = pnand %p3534_p13, %p3533_p12 }
  0x17   : > { %p3536_p3 = pneg %p3535_p0 }
  0x19   : > { %p3541_p7 = pnand %p3539_p5, %p3536_p3 }
  0x1b   : > { %3544 = shalt.err (!%p3541_p7)
}
  0x1c   : > { %s3545_s26 = scalar_lea.vmem %s3804_s15, 256  ;;  %p3553_p2 = scmp.lt.s32.totalorder %s3804_s15, %s3804_s15 }
  0x1d   : > { %p3546_p9 = scmp.ne.s32.totalorder %s3804_s15, %s3545_s26  ;;  %p3554_p12 = scmp.lt.s32.totalorder %s3545_s26, %s3545_s26 }
  0x1f   : > { %p3548_p10 = pnand %p3546_p9, %p3534_p13  ;;  %p3555_p0 = por %p3554_p12, %p3553_p2 }
  0x21   : > { %p3549_p1 = pneg %p3548_p10 }
  0x23   : > { %p3556_p6 = pnand %p3555_p0, %p3549_p1 }
  0x25   : > { %3559 = shalt.err (!%p3556_p6)
}
  0x26   : > { %s3692_s10 = smov 64   ;;  %s3693_s14 = smov 4  }
  0x27   : > { %3311 = dma.hbm_to_vmem [thread:$0]  (!%p3811_p11), %s4588_s3, 256, %s3804_s15, [#allocation7], %s3692_s10, %s3692_s10, %s3693_s14  }
  0x28   : > { %s3560_s22 = scalar_lea.hbm %s4590_s5, 1024 }
  0x29   : > { %p3561_p2 = scmp.ne.s32.totalorder %s4590_s5, %s3560_s22  ;;  %p3567_p10 = scmp.lt.u32.totalorder %s3560_s22, %s4590_s5 }
  0x2b   : > { %p3563_p1 = pnand %p3561_p2, %p3534_p13 }
  0x2d   : > { %p3564_p6 = pneg %p3563_p1 }
  0x2f   : > { %p3569_p3 = pnand %p3567_p10, %p3564_p6 }
  0x31   : > { %3572 = shalt.err (!%p3569_p3)
}
  0x32   : > { %s3573_s15 = scalar_lea.vmem %s3815_s18, 1024  ;;  %p3581_p12 = scmp.lt.s32.totalorder %s3815_s18, %s3815_s18 }
  0x33   : > { %p3574_p5 = scmp.ne.s32.totalorder %s3815_s18, %s3573_s15  ;;  %p3582_p0 = scmp.lt.s32.totalorder %s3573_s15, %s3573_s15 }
  0x35   : > { %p3576_p7 = pnand %p3574_p5, %p3534_p13  ;;  %p3583_p2 = por %p3582_p0, %p3581_p12 }
  0x37   : > { %p3577_p9 = pneg %p3576_p7 }
  0x39   : > { %p3584_p1 = pnand %p3583_p2, %p3577_p9 }
  0x3b   : > { %3587 = shalt.err (!%p3584_p1)
}
  0x3c   : > { %s4595_s10 = smov 128   ;;  %s4596_s14 = smov 8  }
  0x3d   : > { %3314 = dma.hbm_to_vmem [thread:$0]  (!%p3811_p11), %s4590_s5, 1024, %s3815_s18, [#allocation7], %s4595_s10, %s4595_s10, %s4596_s14  }
  0x3e   : > { %s3873_s20 = sadd.s32 1, %s3688_s30   ;;  %s32_s22 = sadd.s32 1, %s3684_s29 }
  0x3f   : > { %s29_s21 = ssub.s32 %s3688_s30, %s3873_s20  ;;  %p39_p6 = scmp.ne.s32.totalorder %s3684_s29, %s3680_s28 }
  0x40   : > { %p30_p13 = scmp.eq.s32.totalorder %s29_s21, 0  ;;  %p40_p10 = scmp.eq.s32.totalorder %s3688_s30, 0 }
  0x41   : > { %p4603_p5 = scmp.eq.s32.totalorder %s3781_s9, 1  ;;  %p3325_p9 = scmp.lt.s32.totalorder %s3688_s30, 2 }
  0x42   : > { %s3882_s23 = scalar_select %p30_p13, %s3684_s29, %s32_s22  }
  0x43   : > { %p41_p3 = por %p40_p10, %p39_p6  ;;  %p3886_p7 = por %p4603_p5, %p39_p6 }
  0x44   : > { %s283_s24 = sand.u32 1, %s3684_s29   ;;  %s2997_s18 = sshll.u32 %s3688_s30, 10 }
  0x45   : > { %s4604_s16 = scalar_select %p3886_p7, 1, 0 }
  0x46   : > { %s2933_s25 = sshll.u32 %s283_s24, 6  ;;  %s3896_s17 = scalar_lea.hbm %s4585_s0, %s2997_s18 }
  0x47   : > { %s287_s19 = scalar_lea.vmem [#allocation3], %s2933_s25  ;;  %p3900_p11 = pnand %p3325_p9, %p41_p3 }
  0x48   : > { %s295_s21 = sshll.u32 %s287_s19, 4  ;;  %s3904_s10 = scalar_lea.sflag [#allocation4], %s283_s24  ;;  %s3898_s21 = int_to_ptr.vmem [resolvable:$true] %s295_s21 }
  0x49   : > { %s3588_s14 = scalar_lea.hbm %s3896_s17, 1024  ;;  %p3590_p0 = pneg %p3900_p11 }
  0x4a   : > { %p3589_p12 = scmp.ne.s32.totalorder %s3896_s17, %s3588_s14  ;;  %s3593_s26 = scalar_lea.hbm %s4585_s0, 2048 }
  0x4b   : > { %p3594_p13 = scmp.lt.u32.totalorder %s3896_s17, %s4585_s0  ;;  %p3595_p6 = scmp.lt.u32.totalorder %s3593_s26, %s3588_s14 }
  0x4c   : > { %p3591_p2 = pnand %p3590_p0, %p3589_p12  ;;  %p3597_p3 = scmp.lt.u32.totalorder %s3588_s14, %s3896_s17 }
  0x4d   : > { %p3596_p10 = por %p3595_p6, %p3594_p13 }
  0x4e   : > { %p3592_p1 = pneg %p3591_p2 }
  0x4f   : > { %p3598_p5 = por %p3597_p3, %p3596_p10 }
  0x51   : > { %p3599_p9 = pnand %p3598_p5, %p3592_p1 }
  0x53   : > { %3602 = shalt.err (!%p3599_p9)
}
  0x54   : > { %s3603_s24 = scalar_lea.vmem %s3898_s21, 1024  ;;  %s3696_s25 = smov [#allocation3]  }
  0x55   : > { %p3604_p12 = scmp.ne.s32.totalorder %s3898_s21, %s3603_s24  ;;  %s3608_s18 = sshll.u32 %s3696_s25, 4  ;;  %s3609_s18 = int_to_ptr.vmem [resolvable:$false] %s3608_s18 }
  0x56   : > { %s3610_s15 = scalar_lea.vmem %s3609_s18, 2048  ;;  %p3611_p4 = scmp.lt.s32.totalorder %s3898_s21, %s3609_s18 }
  0x57   : > { %p3606_p2 = pnand %p3604_p12, %p3590_p0  ;;  %p3612_p13 = scmp.lt.s32.totalorder %s3610_s15, %s3603_s24 }
  0x59   : > { %p3607_p7 = pneg %p3606_p2  ;;  %p3613_p6 = por %p3612_p13, %p3611_p4 }
  0x5b   : > { %p3614_p10 = pnand %p3613_p6, %p3607_p7 }
  0x5d   : > { %3617 = shalt.err (!%p3614_p10)
}
  0x5e   : > { %s4606_s14 = smov 8   ;;  %s4607_s26 = smov 128  }
  0x5f   : > { %3318 = dma.hbm_to_vmem [thread:$0]  (!%p3900_p11), %s3896_s17, 1024, %s3898_s21, %s3904_s10, %s4607_s26, %s4607_s26, %s4606_s14  }
  0x60   : > { %307 = sbr.rel (%p3800_p8) target bundleno = 3801 (0xed9), region = 52  ;;  %s3938_s19 = sand.u32 (!%p3800_p8), 1, %s3680_s28  }
  0x61   : > { %s2938_s24 = sshll.u32 (!%p3800_p8), %s3938_s19, 6  ;;  %s310_s25 = scalar_lea.sflag (!%p3800_p8), [#allocation4], %s3938_s19 }
  0x62   : > { %s3944_s22 = scalar_lea.vmem (!%p3800_p8), [#allocation3], %s2938_s24  ;;  %p4608_p4 = scmp.ne.s32.totalorder (!%p3800_p8), %s4599_s11, 0 }
  0x67   : > { %3663 = dma.done.wait (%p4608_p4), %s310_s25, 1024  }
  0x68   : > { %3665 = vsyncadd (%p4608_p4), %s310_s25, 4294966272  ;;  %p4609_p7 = scmp.eq.s32.totalorder %s3781_s9, 0 }
  0x6a   : > { %3667 = dma.done.wait (%p4609_p7), [#allocation7], 1280   ;;  %p4610_p8 = pmov %p4609_p7 }
  0x6b   : > { %vm365_vm0 = vcmask 261120   ;;  %v357_v0 = vld [vmem:[%s3944_s22] sm:$0xff]  ;;  %v359_v1 = vld [vmem:[%s3944_s22 + $0x10] sm:$0xff]  ;;  %v358_v2 = vld [vmem:[%s3944_s22 + $0x8] sm:$0xff]  ;;  %vm3698_vm1 = vmmov 0   ;;  %s3699_s15 = smov 96  }
  0x6c   : > { %3669 = vsyncadd (%p4610_p8), [#allocation7], 4294966016  ;;  %v366_v3 = vsel %vm365_vm0, %v357_v0, 0.0  ;;  %v372_v4 = vsel %vm365_vm0, %v359_v1, 0.0  ;;  %v360_v5 = vld [vmem:[%s3944_s22 + $0x18] sm:$0xff]  ;;  %v369_v6 = vsel %vm365_vm0, %v358_v2, 0.0 }
  0x6d   : > { %367 = vadd.xlane.f32.xlu0 %v366_v3  ;;  %373 = vadd.xlane.f32.xlu1 %v372_v4  ;;  %v361_v7 = vld [vmem:[%s3944_s22 + $0x20] sm:$0xff]  ;;  %v375_v8 = vsel %vm365_vm0, %v360_v5, 0.0  ;;  %v362_v9 = vld [vmem:[%s3944_s22 + $0x28] sm:$0xff]  ;;  %v363_v12 = vld [vmem:[%s3944_s22 + $0x30] sm:$0xff]  ;;  %vm614_vm2 = vcmask 64512   ;;  %vm812_vm3 = vcmask 130048  }
  0x6e   : > { %v378_v10 = vsel %vm365_vm0, %v361_v7, 0.0  ;;  %v381_v11 = vsel %vm365_vm0, %v362_v9, 0.0  ;;  %v364_v13 = vld [vmem:[%s3944_s22 + $0x38] sm:$0xff]  ;;  %v384_v14 = vsel %vm365_vm0, %v363_v12, 0.0  ;;  %v3384_v56 = vld [vmem:[#allocation6] sm:$0xff]   ;;  %v3385_v57 = vld [vmem:[#allocation6 + $0x8] sm:$0xff]  }
  0x6f   : > { %v387_v15 = vsel %vm365_vm0, %v364_v13, 0.0  ;;  %3076 = vmatprep.subr.bf16.mxu0 %v3384_v56  ;;  %3292 = vmatprep.subr.bf16.mxu1 %v3384_v56  ;;  %s3700_s14 = smov 64   ;;  %s3701_s26 = smov 88   ;;  %vm1620_vm4 = vcmask 130112   ;;  %vm2148_vm5 = vcmask 195712   ;;  %vm2676_vm6 = vcmask 261312  }
  0x70   : > { %3077 = vmatpush3.bf16.msra.mxu0 %v3384_v56  ;;  %3294 = vmatpush3.bf16.msra.mxu1 %v3384_v56  ;;  %s3702_s25 = smov 120   ;;  %s3703_s11 = smov 56  }
  0x71   : > { %370 = vadd.xlane.f32.xlu0 %v369_v6  ;;  %376 = vadd.xlane.f32.xlu1 %v375_v8  ;;  %s3704_s13 = smov 80   ;;  %s3705_s10 = smov 112  }
  0x72   : > { %3078 = vmatprep.subr.bf16.mxu0 %v3385_v57  ;;  %3293 = vmatprep.subr.bf16.mxu1 %v3385_v57  ;;  %s3706_s17 = smov 48   ;;  %s3707_s21 = smov 72  }
  0x73   : > { %s3708_s18 = smov 104   ;;  %p4611_p0 = scmp.ne.s32.totalorder %s4604_s16, 0 }
  0x74   : > { %3079 = vmatpush3.bf16.msra.mxu0 %v3385_v57  ;;  %3295 = vmatpush3.bf16.msra.mxu1 %v3385_v57 }
  0x75   : > { %379 = vadd.xlane.f32.xlu0 %v378_v10  ;;  %382 = vadd.xlane.f32.xlu1 %v381_v11 }
  0x79   : > { %385 = vadd.xlane.f32.xlu0 %v384_v14  ;;  %388 = vadd.xlane.f32.xlu1 %v387_v15 }
  0xfa   : > { %v368_v16 = vpop.xlane.xlu0 %367  ;;  %v374_v17 = vpop.xlane.xlu1 %373 }
  0xfb   : > { %v391_v18 = vmul.f32 0.03125, %v368_v16  ;;  %v393_v19 = vmul.f32 0.03125, %v374_v17 }
  0xfd   : > { %v3970_v20 = vsub.f32 %v357_v0, %v391_v18  ;;  %v3972_v21 = vsub.f32 %v359_v1, %v393_v19  ;;  %v2942_v19 = vld [vmem:[%s4586_s1] ss:$0 sm:$0xff] }
  0xfe   : > { %v371_v22 = vpop.xlane.xlu0 %370  ;;  %v377_v23 = vpop.xlane.xlu1 %376 }
  0xff   : > { %v392_v24 = vmul.f32 0.03125, %v371_v22  ;;  %v394_v25 = vmul.f32 0.03125, %v377_v23  ;;  %v407_v26 = vmul.f32 %v3970_v20, %v3970_v20  ;;  %v409_v27 = vmul.f32 %v3972_v21, %v3972_v21 }
 0x101   : > { %v3978_v28 = vsub.f32 %v358_v2, %v392_v24  ;;  %v3980_v29 = vsub.f32 %v360_v5, %v394_v25  ;;  %v415_v30 = vsel %vm365_vm0, %v407_v26, 0.0  ;;  %v421_v33 = vsel %vm365_vm0, %v409_v27, 0.0  ;;  %v2943_v27 = vld [vmem:[%s4587_s2] ss:$0 sm:$0xff] }
 0x102   : > { %416 = vadd.xlane.f32.xlu0 %v415_v30  ;;  %v380_v31 = vpop.xlane.xlu0 %379  ;;  %v383_v32 = vpop.xlane.xlu1 %382 }
 0x103   : > { %v395_v34 = vmul.f32 0.03125, %v380_v31  ;;  %v396_v35 = vmul.f32 0.03125, %v383_v32  ;;  %v408_v36 = vmul.f32 %v3978_v28, %v3978_v28  ;;  %v410_v37 = vmul.f32 %v3980_v29, %v3980_v29 }
 0x105   : > { %v3988_v38 = vsub.f32 %v361_v7, %v395_v34  ;;  %v3990_v39 = vsub.f32 %v362_v9, %v396_v35  ;;  %v418_v40 = vsel %vm365_vm0, %v408_v36, 0.0  ;;  %v424_v43 = vsel %vm365_vm0, %v410_v37, 0.0 }
 0x106   : > { %422 = vadd.xlane.f32.xlu0 %v421_v33  ;;  %419 = vadd.xlane.f32.xlu1 %v418_v40  ;;  %v386_v41 = vpop.xlane.xlu0 %385  ;;  %v389_v42 = vpop.xlane.xlu1 %388 }
 0x107   : > { %v397_v44 = vmul.f32 0.03125, %v386_v41  ;;  %v398_v45 = vmul.f32 0.03125, %v389_v42  ;;  %v411_v46 = vmul.f32 %v3988_v38, %v3988_v38  ;;  %v412_v47 = vmul.f32 %v3990_v39, %v3990_v39 }
 0x109   : > { %v3998_v48 = vsub.f32 %v363_v12, %v397_v44  ;;  %v4000_v49 = vsub.f32 %v364_v13, %v398_v45  ;;  %v427_v50 = vsel %vm365_vm0, %v411_v46, 0.0  ;;  %v430_v51 = vsel %vm365_vm0, %v412_v47, 0.0 }
 0x10a   : > { %425 = vadd.xlane.f32.xlu1 %v424_v43  ;;  %428 = vadd.xlane.f32.xlu0 %v427_v50 }
 0x10b   : > { %v413_v52 = vmul.f32 %v3998_v48, %v3998_v48  ;;  %v414_v53 = vmul.f32 %v4000_v49, %v4000_v49 }
 0x10d   : > { %v433_v54 = vsel %vm365_vm0, %v413_v52, 0.0  ;;  %v436_v55 = vsel %vm365_vm0, %v414_v53, 0.0 }
 0x10e   : > { %431 = vadd.xlane.f32.xlu1 %v430_v51  ;;  %434 = vadd.xlane.f32.xlu0 %v433_v54 }
 0x112   : > { %437 = vadd.xlane.f32.xlu1 %v436_v55 }
 0x18f   : > { %v417_v58 = vpop.xlane.xlu0 %416 }
 0x190   : > { %v439_v59 = vmul.f32 0.03125, %v417_v58  ;;  %v2944_v58 = vld [vmem:[%s4589_s4] ss:$0 sm:$0xff] }
 0x192   : > { %v447_v60 = vadd.f32 1e-05, %v439_v59 }
 0x193   : > { %v420_v61 = vpop.xlane.xlu1 %419  ;;  %v423_v62 = vpop.xlane.xlu0 %422 }
 0x194   : > { %3388 = vrsqrt.f32 %v447_v60  ;;  %v440_v63 = vmul.f32 0.03125, %v420_v61  ;;  %v441_v0 = vmul.f32 0.03125, %v423_v62 }
 0x196   : > { %v448_v1 = vadd.f32 1e-05, %v440_v63  ;;  %v449_v2 = vadd.f32 1e-05, %v441_v0 }
 0x197   : > { %v426_v3 = vpop.xlane.xlu1 %425  ;;  %v429_v4 = vpop.xlane.xlu0 %428 }
 0x198   : > { %3390 = vrsqrt.f32 %v448_v1  ;;  %v442_v5 = vmul.f32 0.03125, %v426_v3  ;;  %v443_v6 = vmul.f32 0.03125, %v429_v4 }
 0x199   : > { %3392 = vrsqrt.f32 %v449_v2 }
 0x19a   : > { %v450_v7 = vadd.f32 1e-05, %v442_v5  ;;  %v451_v8 = vadd.f32 1e-05, %v443_v6 }
 0x19b   : > { %v432_v9 = vpop.xlane.xlu1 %431  ;;  %v435_v10 = vpop.xlane.xlu0 %434 }
 0x19c   : > { %3394 = vrsqrt.f32 %v450_v7  ;;  %v444_v11 = vmul.f32 0.03125, %v432_v9  ;;  %v445_v12 = vmul.f32 0.03125, %v435_v10 }
 0x19d   : > { %3396 = vrsqrt.f32 %v451_v8 }
 0x19e   : > { %v3389_v13 = vpop.eup %3388  ;;  %v452_v14 = vadd.f32 1e-05, %v444_v11  ;;  %v453_v15 = vadd.f32 1e-05, %v445_v12 }
 0x19f   : > { %v438_v16 = vpop.xlane.xlu1 %437  ;;  %v463_v17 = vmul.f32 %v3389_v13, %v3970_v20 }
 0x1a0   : > { %3398 = vrsqrt.f32 %v452_v14  ;;  %v446_v18 = vmul.f32 0.03125, %v438_v16 }
 0x1a1   : > { %3400 = vrsqrt.f32 %v453_v15  ;;  %v478_v26 = vmul.f32 %v2942_v19, %v463_v17 }
 0x1a2   : > { %v3391_v22 = vpop.eup %3390  ;;  %v454_v23 = vadd.f32 1e-05, %v446_v18 }
 0x1a3   : > { %v3393_v24 = vpop.eup %3392  ;;  %v464_v25 = vmul.f32 %v3391_v22, %v3978_v28  ;;  %v493_v33 = vadd.f32 %v2943_v27, %v478_v26  ;;  %v610_v26 = vld [vmem:[#allocation8 + $0x8] sm:$0xff] }
 0x1a4   : > { %3402 = vrsqrt.f32 %v454_v23  ;;  %v465_v20 = vmul.f32 %v3393_v24, %v3972_v21  ;;  %v609_v24 = vld [vmem:[#allocation8] sm:$0xff] }
 0x1a5   : > { %v479_v30 = vmul.f32 %v2942_v19, %v464_v25 }
 0x1a6   : > { %v3395_v31 = vpop.eup %3394  ;;  %v480_v36 = vmul.f32 %v2942_v19, %v465_v20 }
 0x1a7   : > { %v3397_v32 = vpop.eup %3396  ;;  %v494_v34 = vadd.f32 %v2943_v27, %v479_v30  ;;  %v466_v35 = vmul.f32 %v3395_v31, %v3980_v29 }
 0x1a8   : > { %v467_v37 = vmul.f32 %v3397_v32, %v3988_v38  ;;  %v495_v43 = vadd.f32 %v2943_v27, %v480_v36 }
 0x1a9   : > { %v501_v40 = vpack.c.bf16 %v494_v34, %v493_v33  ;;  %v481_v28 = vmul.f32 %v2942_v19, %v466_v35 }
 0x1aa   : > { %v3399_v41 = vpop.eup %3398  ;;  %v482_v45 = vmul.f32 %v2942_v19, %v467_v37 }
 0x1ab   : > { %v3401_v42 = vpop.eup %3400  ;;  %3080 = vmatprep.mubr.msk.bf16.mxu0 %vm365_vm0, %v501_v40  ;;  %v496_v44 = vadd.f32 %v2943_v27, %v481_v28  ;;  %v468_v21 = vmul.f32 %v3399_v41, %v3990_v39 }
 0x1ac   : > { %v469_v46 = vmul.f32 %v3401_v42, %v3998_v48  ;;  %v497_v29 = vadd.f32 %v2943_v27, %v482_v45  ;;  %v3697_v48 = vmov 0.0  }
 0x1ad   : > { %v502_v47 = vpack.c.bf16 %v496_v44, %v495_v43  ;;  %v483_v50 = vmul.f32 %v2942_v19, %v468_v21  ;;  %3088 = vmatprep.subr.bf16.mxu1 %v3697_v48  ;;  %3100 = vmatprep.subr.bf16.mxu0 %v3697_v48 }
 0x1ae   : > { %v3403_v51 = vpop.eup %3402  ;;  %v484_v53 = vmul.f32 %v2942_v19, %v469_v46 }
 0x1af   : > { %3081 = vmatmul.mubr.msk.bf16.vlgmr.msra.gmra.mrb[0].mxu0 %vm365_vm0, %v502_v47  ;;  %v498_v38 = vadd.f32 %v2943_v27, %v483_v50  ;;  %v470_v52 = vmul.f32 %v3403_v51, %v4000_v49 }
 0x1b0   : > { %v499_v56 = vadd.f32 %v2943_v27, %v484_v53  ;;  %3102 = vmatprep.mubr.msk.bf16.mxu0 %vm3698_vm1, %v3697_v48 }
 0x1b1   : > { %v503_v54 = vpack.c.bf16 %v498_v38, %v497_v29  ;;  %v485_v55 = vmul.f32 %v2942_v19, %v470_v52 }
 0x1b3   : > { %3084 = vmatprep.mubr.msk.bf16.mxu1 %vm365_vm0, %v503_v54  ;;  %v500_v57 = vadd.f32 %v2943_v27, %v485_v55 }
 0x1b5   : > { %v504_v39 = vpack.c.bf16 %v500_v57, %v499_v56 }
 0x1b7   : > { %3085 = vmatmul.mubr.msk.bf16.vlgmr.msra.gmra.mrb[0].mxu1 %vm365_vm0, %v504_v39 }
 0x1b8   : > { %3090 = vmatprep.mubr.msk.bf16.mxu1 %vm3698_vm1, %v3697_v48 }
 0x282   : > { %v3082_v49 = vpop.f32.mrb[0].mxu0 }
 0x283   : > { %v574_v59 = vpop.f32.mrb[1].mxu0  ;;  %v583_v61 = vadd.f32 %v3082_v49, %v2944_v58 }
 0x284   : > { %v3083_v60 = vpop.f32.mrb[2].mxu0  ;;  %v575_v0 = vadd.f32 %v2944_v58, %v574_v59 }
 0x285   : > { %v586_v62 = vadd.f32 %v3083_v60, %v2944_v58  ;;  %v577_v63 = vpop.f32.mrb[3].mxu0 }
 0x286   : > { %v578_v1 = vadd.f32 %v2944_v58, %v577_v63 }
 0x287   : > { %v4037_v2 = vpack.c.bf16 %v586_v62, %v583_v61 }
 0x288   : > { %v4039_v3 = vpack.c.bf16 %v578_v1, %v575_v0 }
 0x289   : > { %663 = vrot.lane.b32.xlu1 %v4037_v2, %s3699_s15 }
 0x28a   : > { %612 = vrot.lane.b32.xlu0 %v4039_v3, %s3699_s15  ;;  %v3086_v4 = vpop.f32.mrb[0].mxu1 }
 0x28b   : > { %v590_v5 = vpop.f32.mrb[1].mxu1  ;;  %v599_v7 = vadd.f32 %v3086_v4, %v2944_v58 }
 0x28c   : > { %v3087_v6 = vpop.f32.mrb[2].mxu1  ;;  %v591_v10 = vadd.f32 %v2944_v58, %v590_v5 }
 0x28d   : > { %v602_v8 = vadd.f32 %v3087_v6, %v2944_v58  ;;  %v593_v9 = vpop.f32.mrb[3].mxu1 }
 0x28e   : > { %v594_v11 = vadd.f32 %v2944_v58, %v593_v9 }
 0x28f   : > { %v4043_v12 = vpack.c.bf16 %v602_v8, %v599_v7 }
 0x290   : > { %v4045_v13 = vpack.c.bf16 %v594_v11, %v591_v10 }
 0x292   : > { %713 = vrot.lane.b32.xlu1 %v4045_v13, %s3699_s15 }
 0x296   : > { %763 = vrot.lane.b32.xlu1 %v4043_v12, %s3699_s15  ;;  %s3709_s15 = smov 40  }
 0x2fb   : > { %v664_v16 = vpop.permute.xlu1 %663 }
 0x2fc   : > { %v613_v14 = vpop.permute.xlu0 %612  ;;  %v669_v18 = vsel %vm614_vm2, %v664_v16, 0 }
 0x2fd   : > { %v619_v15 = vsel %vm614_vm2, %v613_v14, 0 }
 0x2fe   : > { %3089 = vmatpush3.bf16.xpose.msra.mxu1 %v619_v15 }
 0x2ff   : > { %3094 = vmatprep.subr.bf16.mxu1 %v3697_v48 }
 0x304   : > { %v714_v17 = vpop.permute.xlu1 %713 }
 0x305   : > { %v719_v19 = vsel %vm614_vm2, %v714_v17, 0  ;;  %3091 = vmatmul.mubr.msk.bf16.vlgmr.msra.gmra.mrb[4].mxu1 %vm614_vm2, %v4039_v3 }
 0x306   : > { %3095 = vmatpush3.bf16.xpose.msra.mxu1 %v669_v18  ;;  %3101 = vmatpush3.bf16.xpose.msra.mxu0 %v719_v19 }
 0x307   : > { %3096 = vmatprep.mubr.msk.bf16.mxu1 %vm3698_vm1, %v3697_v48  ;;  %3106 = vmatprep.subr.bf16.mxu1 %v3697_v48 }
 0x308   : > { %3112 = vmatprep.subr.bf16.mxu0 %v3697_v48  ;;  %v764_v22 = vpop.permute.xlu1 %763 }
 0x309   : > { %v769_v23 = vsel %vm614_vm2, %v764_v22, 0 }
 0x30d   : > { %3097 = vmatmul.mubr.msk.bf16.vlgmr.msra.gmra.mrb[8].mxu1 %vm614_vm2, %v4037_v2  ;;  %3103 = vmatmul.mubr.msk.bf16.vlgmr.msra.gmra.mrb[4].mxu0 %vm614_vm2, %v4045_v13 }
 0x30e   : > { %3107 = vmatpush3.bf16.xpose.msra.mxu1 %v769_v23  ;;  %3108 = vmatprep.mubr.msk.bf16.mxu1 %vm3698_vm1, %v3697_v48 }
 0x30f   : > { %3118 = vmatprep.subr.bf16.mxu1 %v3697_v48  ;;  %3114 = vmatprep.mubr.msk.bf16.mxu0 %vm3698_vm1, %v3697_v48 }
 0x315   : > { %3109 = vmatmul.mubr.msk.bf16.vlgmr.msra.gmra.mrb[12].mxu1 %vm614_vm2, %v4043_v12 }
 0x316   : > { %3120 = vmatprep.mubr.msk.bf16.mxu1 %vm3698_vm1, %v3697_v48 }
 0x3d8   : > { %v655_v25 = vpop.f32.mrb[4].mxu1 }
 0x3d9   : > { %v656_v27 = vadd.f32 %v655_v25, %v609_v24  ;;  %v3092_v20 = vpop.f32.mrb[5].mxu1 }
 0x3da   : > { %v658_v30 = vpop.f32.mrb[6].mxu1 }
 0x3db   : > { %v659_v31 = vadd.f32 %v658_v30, %v610_v26  ;;  %v3093_v32 = vpop.f32.mrb[7].mxu1  ;;  %v813_v33 = vsel %vm812_vm3, %v656_v27, -inf }
 0x3dc   : > { %814 = vmax.xlane.f32.xlu0 %v813_v33 }
 0x3dd   : > { %v816_v34 = vsel %vm812_vm3, %v659_v31, -inf }
 0x3de   : > { %817 = vmax.xlane.f32.xlu1 %v816_v34 }
 0x3e0   : > { %v705_v35 = vpop.f32.mrb[8].mxu1  ;;  %v755_v36 = vpop.f32.mrb[4].mxu0 }
 0x3e1   : > { %v706_v37 = vadd.f32 %v705_v35, %v609_v24  ;;  %v3098_v40 = vpop.f32.mrb[9].mxu1  ;;  %v3104_v28 = vpop.f32.mrb[5].mxu0  ;;  %v756_v50 = vadd.f32 %v755_v36, %v609_v24 }
 0x3e2   : > { %v708_v41 = vpop.f32.mrb[10].mxu1  ;;  %v758_v42 = vpop.f32.mrb[6].mxu0 }
 0x3e3   : > { %v4075_v43 = vadd.f32 %v708_v41, %v610_v26  ;;  %v759_v44 = vadd.f32 %v758_v42, %v610_v26  ;;  %v3099_v21 = vpop.f32.mrb[11].mxu1  ;;  %v3105_v45 = vpop.f32.mrb[7].mxu0  ;;  %v819_v46 = vsel %vm812_vm3, %v706_v37, -inf  ;;  %v825_v56 = vsel %vm812_vm3, %v756_v50, -inf }
 0x3e4   : > { %820 = vmax.xlane.f32.xlu0 %v819_v46 }
 0x3e5   : > { %v828_v47 = vsel %vm812_vm3, %v759_v44, -inf  ;;  %v822_v51 = vsel %vm812_vm3, %v4075_v43, -inf }
 0x3e6   : > { %829 = vmax.xlane.f32.xlu1 %v828_v47 }
 0x3e8   : > { %823 = vmax.xlane.f32.xlu0 %v822_v51  ;;  %v805_v29 = vpop.f32.mrb[12].mxu1 }
 0x3e9   : > { %v3110_v38 = vpop.f32.mrb[13].mxu1  ;;  %v806_v53 = vadd.f32 %v805_v29, %v609_v24 }
 0x3ea   : > { %v808_v52 = vpop.f32.mrb[14].mxu1 }
 0x3eb   : > { %v4081_v54 = vadd.f32 %v808_v52, %v610_v26  ;;  %v3111_v55 = vpop.f32.mrb[15].mxu1  ;;  %v831_v39 = vsel %vm812_vm3, %v806_v53, -inf }
 0x3ec   : > { %826 = vmax.xlane.f32.xlu0 %v825_v56 }
 0x3ed   : > { %v834_v57 = vsel %vm812_vm3, %v4081_v54, -inf }
 0x3ee   : > { %835 = vmax.xlane.f32.xlu1 %v834_v57 }
 0x3f0   : > { %832 = vmax.xlane.f32.xlu0 %v831_v39 }
 0x469   : > { %v815_v49 = vpop.xlane.xlu0 %814 }
 0x46a   : > { %v837_v58 = vsub.f32 %v656_v27, %v815_v49 }
 0x46b   : > { %v818_v59 = vpop.xlane.xlu1 %817 }
 0x46c   : > { %v845_v60 = vmul.f32 1.442695, %v837_v58  ;;  %v838_v61 = vsub.f32 %v659_v31, %v818_v59 }
 0x46e   : > { %3404 = vpow2.f32 %v845_v60  ;;  %v847_v62 = vmul.f32 1.442695, %v838_v61 }
 0x470   : > { %3406 = vpow2.f32 %v847_v62 }
 0x471   : > { %v821_v63 = vpop.xlane.xlu0 %820 }
 0x472   : > { %v839_v7 = vsub.f32 %v706_v37, %v821_v63 }
 0x473   : > { %v830_v0 = vpop.xlane.xlu1 %829 }
 0x474   : > { %v842_v1 = vsub.f32 %v759_v44, %v830_v0  ;;  %v849_v15 = vmul.f32 1.442695, %v839_v7 }
 0x475   : > { %v824_v4 = vpop.xlane.xlu0 %823 }
 0x476   : > { %v855_v5 = vmul.f32 1.442695, %v842_v1  ;;  %v840_v26 = vsub.f32 %v4075_v43, %v824_v4 }
 0x478   : > { %v4087_v6 = vpop.eup %3404  ;;  %3408 = vpow2.f32 %v855_v5  ;;  %v851_v20 = vmul.f32 1.442695, %v840_v26 }
 0x479   : > { %v827_v8 = vpop.xlane.xlu0 %826  ;;  %v861_v9 = vsel %vm812_vm3, %v4087_v6, 0.0 }
 0x47a   : > { %v4091_v10 = vpop.eup %3406  ;;  %v841_v11 = vsub.f32 %v756_v50, %v827_v8  ;;  %862 = vadd.xlane.f32.xlu0 %v861_v9 }
 0x47b   : > { %v864_v14 = vsel %vm812_vm3, %v4091_v10, 0.0  ;;  %v836_v35 = vpop.xlane.xlu1 %835 }
 0x47c   : > { %v853_v16 = vmul.f32 1.442695, %v841_v11  ;;  %865 = vadd.xlane.f32.xlu1 %v864_v14  ;;  %v844_v36 = vsub.f32 %v4081_v54, %v836_v35  ;;  %v1103_v35 = vld [vmem:[#allocation8 + $0x18] sm:$0xff] }
 0x47d   : > { %v833_v25 = vpop.xlane.xlu0 %832 }
 0x47e   : > { %3410 = vpow2.f32 %v853_v16  ;;  %v843_v27 = vsub.f32 %v806_v53, %v833_v25  ;;  %v859_v37 = vmul.f32 1.442695, %v844_v36 }
 0x47f   : > { %3412 = vpow2.f32 %v849_v15 }
 0x480   : > { %v857_v30 = vmul.f32 1.442695, %v843_v27  ;;  %3414 = vpow2.f32 %v851_v20 }
 0x482   : > { %v4095_v17 = vpop.eup %3408  ;;  %3416 = vpow2.f32 %v857_v30 }
 0x483   : > { %v876_v18 = vsel %vm812_vm3, %v4095_v17, 0.0  ;;  %3418 = vpow2.f32 %v859_v37 }
 0x484   : > { %877 = vadd.xlane.f32.xlu1 %v876_v18 }
 0x488   : > { %v4099_v19 = vpop.eup %3410 }
 0x489   : > { %v873_v22 = vsel %vm812_vm3, %v4099_v19, 0.0  ;;  %v4103_v23 = vpop.eup %3412 }
 0x48a   : > { %874 = vadd.xlane.f32.xlu0 %v873_v22  ;;  %v867_v24 = vsel %vm812_vm3, %v4103_v23, 0.0  ;;  %v4112_v31 = vpop.eup %3414 }
 0x48b   : > { %v870_v33 = vsel %vm812_vm3, %v4112_v31, 0.0 }
 0x48c   : > { %v4114_v32 = vpop.eup %3416 }
 0x48d   : > { %v879_v34 = vsel %vm812_vm3, %v4114_v32, 0.0  ;;  %v4126_v40 = vpop.eup %3418 }
 0x48e   : > { %868 = vadd.xlane.f32.xlu0 %v867_v24  ;;  %v882_v28 = vsel %vm812_vm3, %v4126_v40, 0.0 }
 0x495   : > { %952 = vrot.lane.b32.xlu1 %v4037_v2, %s3700_s14 }
 0x499   : > { %999 = vrot.lane.b32.xlu1 %v4045_v13, %s3700_s14 }
 0x49d   : > { %1046 = vrot.lane.b32.xlu1 %v4043_v12, %s3700_s14 }
 0x4a4   : > { %905 = vrot.lane.b32.xlu0 %v4039_v3, %s3700_s14  ;;  %s3710_s14 = smov 8  }
 0x4c1   : > { %871 = vadd.xlane.f32.xlu1 %v870_v33  ;;  %v1102_v33 = vld [vmem:[#allocation8 + $0x10] sm:$0xff] }
 0x4c3   : > { %880 = vadd.xlane.f32.xlu0 %v879_v34 }
 0x4d2   : > { %1157 = vrot.lane.b32.xlu1 %v4037_v2, %s3701_s26 }
 0x4d9   : > { %1106 = vrot.lane.b32.xlu0 %v4039_v3, %s3701_s26 }
 0x4dd   : > { %1104 = vrot.lane.b32.xlu0 %v4039_v3, %s3702_s25 }
 0x4e1   : > { %1155 = vrot.lane.b32.xlu0 %v4037_v2, %s3702_s25 }
 0x4e5   : > { %1206 = vrot.lane.b32.xlu0 %v4045_v13, %s3702_s25 }
 0x4f6   : > { %883 = vadd.xlane.f32.xlu1 %v882_v28 }
 0x507   : > { %1208 = vrot.lane.b32.xlu1 %v4045_v13, %s3701_s26  ;;  %v863_v42 = vpop.xlane.xlu0 %862 }
 0x509   : > { %v866_v41 = vpop.xlane.xlu1 %865 }
 0x50a   : > { %3420 = vrcp.f32 %v866_v41 }
 0x50b   : > { %1259 = vrot.lane.b32.xlu1 %v4043_v12, %s3701_s26  ;;  %3422 = vrcp.f32 %v863_v42  ;;  %s3711_s26 = smov 16  }
 0x50f   : > { %1257 = vrot.lane.b32.xlu1 %v4043_v12, %s3702_s25 }
 0x511   : > { %v878_v43 = vpop.xlane.xlu1 %877 }
 0x514   : > { %v3421_v45 = vpop.eup %3420 }
 0x515   : > { %v953_v44 = vpop.permute.xlu1 %952  ;;  %v3423_v47 = vpop.eup %3422  ;;  %v894_v50 = vmul.f32 %v3421_v45, %v4091_v10 }
 0x516   : > { %3119 = vmatpush3.bf16.msra.mxu1 %v953_v44  ;;  %v893_v51 = vmul.f32 %v3423_v47, %v4087_v6 }
 0x517   : > { %v875_v21 = vpop.xlane.xlu0 %874  ;;  %3130 = vmatprep.subr.bf16.mxu1 %v3697_v48 }
 0x518   : > { %3424 = vrcp.f32 %v875_v21  ;;  %v901_v38 = vpack.c.bf16 %v894_v50, %v893_v51 }
 0x519   : > { %3426 = vrcp.f32 %v878_v43  ;;  %v1000_v53 = vpop.permute.xlu1 %999 }
 0x51b   : > { %v869_v46 = vpop.xlane.xlu0 %868 }
 0x51c   : > { %3428 = vrcp.f32 %v869_v46 }
 0x51d   : > { %v1047_v39 = vpop.permute.xlu1 %1046 }
 0x51f   : > { %v906_v29 = vpop.permute.xlu0 %905 }
 0x520   : > { %3113 = vmatpush3.bf16.msra.mxu0 %v906_v29 }
 0x521   : > { %3124 = vmatprep.subr.bf16.mxu0 %v3697_v48 }
 0x522   : > { %v3425_v52 = vpop.eup %3424 }
 0x523   : > { %3115 = vmatmul.mubr.msk.bf16.vlgmr.msra.gmra.mrb[8].mxu0 %vm812_vm3, %v901_v38  ;;  %v3427_v54 = vpop.eup %3426  ;;  %v897_v55 = vmul.f32 %v3425_v52, %v4099_v19 }
 0x524   : > { %3125 = vmatpush3.bf16.msra.mxu0 %v1000_v53  ;;  %3126 = vmatprep.mubr.msk.bf16.mxu0 %vm3698_vm1, %v3697_v48  ;;  %v898_v56 = vmul.f32 %v3427_v54, %v4095_v17 }
 0x525   : > { %3136 = vmatprep.subr.bf16.mxu0 %v3697_v48 }
 0x526   : > { %v903_v57 = vpack.c.bf16 %v898_v56, %v897_v55  ;;  %v3429_v61 = vpop.eup %3428 }
 0x527   : > { %v895_v63 = vmul.f32 %v3429_v61, %v4103_v23 }
 0x52b   : > { %3127 = vmatmul.mubr.msk.bf16.vlgmr.msra.gmra.mrb[12].mxu0 %vm812_vm3, %v903_v57 }
 0x52c   : > { %3138 = vmatprep.mubr.msk.bf16.mxu0 %vm3698_vm1, %v3697_v48 }
 0x54e   : > { %v872_v49 = vpop.xlane.xlu1 %871 }
 0x54f   : > { %3430 = vrcp.f32 %v872_v49 }
 0x550   : > { %v881_v58 = vpop.xlane.xlu0 %880 }
 0x551   : > { %3432 = vrcp.f32 %v881_v58 }
 0x552   : > { %v1158_v5 = vpop.permute.xlu1 %1157 }
 0x553   : > { %v1163_v18 = vsel %vm614_vm2, %v1158_v5, 0 }
 0x554   : > { %v1107_v59 = vpop.permute.xlu0 %1106 }
 0x555   : > { %v1112_v60 = vsel %vm614_vm2, %v1107_v59, 0 }
 0x556   : > { %3137 = vmatpush3.bf16.xpose.msra.mxu0 %v1112_v60 }
 0x557   : > { %3148 = vmatprep.subr.bf16.mxu0 %v3697_v48 }
 0x558   : > { %v1105_v1 = vpop.permute.xlu0 %1104 }
 0x559   : > { %v3431_v62 = vpop.eup %3430 }
 0x55a   : > { %v896_v0 = vmul.f32 %v3431_v62, %v4112_v31 }
 0x55b   : > { %v3433_v10 = vpop.eup %3432 }
 0x55c   : > { %v902_v4 = vpack.c.bf16 %v896_v0, %v895_v63  ;;  %v1156_v9 = vpop.permute.xlu0 %1155  ;;  %v899_v14 = vmul.f32 %v3433_v10, %v4114_v32 }
 0x55d   : > { %3139 = vmatmul.mubr.msk.bf16.vlgmr.msra.gmra.mrb[16].mxu0 %vm614_vm2, %v1105_v1 }
 0x55e   : > { %3121 = vmatmul.mubr.msk.bf16.vlgmr.msra.gmra.mrb[16].mxu1 %vm812_vm3, %v902_v4  ;;  %3150 = vmatprep.mubr.msk.bf16.mxu0 %vm3698_vm1, %v3697_v48 }
 0x55f   : > { %3131 = vmatpush3.bf16.msra.mxu1 %v1047_v39  ;;  %3132 = vmatprep.mubr.msk.bf16.mxu1 %vm3698_vm1, %v3697_v48 }
 0x560   : > { %3142 = vmatprep.subr.bf16.mxu1 %v3697_v48  ;;  %v1207_v15 = vpop.permute.xlu0 %1206 }
 0x583   : > { %v884_v6 = vpop.xlane.xlu1 %883 }
 0x584   : > { %3434 = vrcp.f32 %v884_v6 }
 0x587   : > { %v1209_v7 = vpop.permute.xlu1 %1208 }
 0x588   : > { %v1214_v8 = vsel %vm614_vm2, %v1209_v7, 0 }
 0x589   : > { %3149 = vmatpush3.bf16.xpose.msra.mxu0 %v1214_v8 }
 0x58a   : > { %3160 = vmatprep.subr.bf16.mxu0 %v3697_v48 }
 0x58b   : > { %v1260_v19 = vpop.permute.xlu1 %1259 }
 0x58c   : > { %v1265_v22 = vsel %vm614_vm2, %v1260_v19, 0 }
 0x58e   : > { %v3435_v11 = vpop.eup %3434 }
 0x58f   : > { %v900_v16 = vmul.f32 %v3435_v11, %v4126_v40  ;;  %v1258_v23 = vpop.permute.xlu1 %1257 }
 0x590   : > { %3151 = vmatmul.mubr.msk.bf16.vlgmr.msra.gmra.mrb[20].mxu0 %vm614_vm2, %v1207_v15 }
 0x591   : > { %v904_v17 = vpack.c.bf16 %v900_v16, %v899_v14  ;;  %3162 = vmatprep.mubr.msk.bf16.mxu0 %vm3698_vm1, %v3697_v48 }
 0x593   : > { %3133 = vmatmul.mubr.msk.bf16.vlgmr.msra.gmra.mrb[20].mxu1 %vm812_vm3, %v904_v17 }
 0x594   : > { %3143 = vmatpush3.bf16.xpose.msra.mxu1 %v1163_v18  ;;  %3144 = vmatprep.mubr.msk.bf16.mxu1 %vm3698_vm1, %v3697_v48 }
 0x595   : > { %3154 = vmatprep.subr.bf16.mxu1 %v3697_v48 }
 0x59b   : > { %3145 = vmatmul.mubr.msk.bf16.vlgmr.msra.gmra.mrb[24].mxu1 %vm614_vm2, %v1156_v9 }
 0x59c   : > { %3155 = vmatpush3.bf16.xpose.msra.mxu1 %v1265_v22  ;;  %3156 = vmatprep.mubr.msk.bf16.mxu1 %vm3698_vm1, %v3697_v48 }
 0x59d   : > { %3166 = vmatprep.subr.bf16.mxu1 %v3697_v48 }
 0x5a3   : > { %3157 = vmatmul.mubr.msk.bf16.vlgmr.msra.gmra.mrb[28].mxu1 %vm614_vm2, %v1258_v23 }
 0x5a4   : > { %3168 = vmatprep.mubr.msk.bf16.mxu1 %vm3698_vm1, %v3697_v48 }
 0x5f6   : > { %v945_v24 = vpop.f32.mrb[8].mxu0 }
 0x5f7   : > { %1093 = vst.msk [vmem:[#allocation2] sm:$0xff] %vm614_vm2, %v945_v24  ;;  %v3116_v25 = vpop.f32.mrb[9].mxu0 }
 0x5f8   : > { %v948_v26 = vpop.f32.mrb[10].mxu0 }
 0x5f9   : > { %1094 = vst.msk [vmem:[#allocation2 + $0x8] sm:$0xff] %vm614_vm2, %v948_v26  ;;  %v3117_v27 = vpop.f32.mrb[11].mxu0 }
 0x5fe   : > { %v1039_v20 = vpop.f32.mrb[12].mxu0 }
 0x5ff   : > { %1097 = vst.msk [vmem:[#allocation2 + $0x20] sm:$0xff] %vm614_vm2, %v1039_v20  ;;  %v3128_v30 = vpop.f32.mrb[13].mxu0 }
 0x600   : > { %v1042_v31 = vpop.f32.mrb[14].mxu0 }
 0x601   : > { %1098 = vst.msk [vmem:[#allocation2 + $0x28] sm:$0xff] %vm614_vm2, %v1042_v31  ;;  %v3129_v32 = vpop.f32.mrb[15].mxu0 }
 0x630   : > { %v1148_v34 = vpop.f32.mrb[16].mxu0 }
 0x631   : > { %v1149_v36 = vadd.f32 %v1148_v34, %v1102_v33  ;;  %v992_v37 = vpop.f32.mrb[16].mxu1  ;;  %v3140_v40 = vpop.f32.mrb[17].mxu0 }
 0x632   : > { %1095 = vst.msk [vmem:[#allocation2 + $0x10] sm:$0xff] %vm614_vm2, %v992_v37  ;;  %v3122_v28 = vpop.f32.mrb[17].mxu1  ;;  %v1151_v41 = vpop.f32.mrb[18].mxu0 }
 0x633   : > { %v1152_v42 = vadd.f32 %v1151_v41, %v1103_v35  ;;  %v995_v43 = vpop.f32.mrb[18].mxu1  ;;  %v3141_v44 = vpop.f32.mrb[19].mxu0  ;;  %v1308_v21 = vsel %vm812_vm3, %v1149_v36, -inf }
 0x634   : > { %1096 = vst.msk [vmem:[#allocation2 + $0x18] sm:$0xff] %vm614_vm2, %v995_v43  ;;  %1309 = vmax.xlane.f32.xlu0 %v1308_v21  ;;  %v3123_v45 = vpop.f32.mrb[19].mxu1 }
 0x635   : > { %v1311_v46 = vsel %vm812_vm3, %v1152_v42, -inf }
 0x636   : > { %1312 = vmax.xlane.f32.xlu1 %v1311_v46 }
 0x663   : > { %v1250_v47 = vpop.f32.mrb[20].mxu0 }
 0x664   : > { %v3152_v50 = vpop.f32.mrb[21].mxu0  ;;  %v1251_v62 = vadd.f32 %v1250_v47, %v1102_v33 }
 0x665   : > { %v1253_v51 = vpop.f32.mrb[22].mxu0 }
 0x666   : > { %v4185_v29 = vadd.f32 %v1253_v51, %v1103_v35  ;;  %v1086_v38 = vpop.f32.mrb[20].mxu1  ;;  %v3153_v52 = vpop.f32.mrb[23].mxu0  ;;  %v1320_v7 = vsel %vm812_vm3, %v1251_v62, -inf }
 0x667   : > { %1099 = vst.msk [vmem:[#allocation2 + $0x30] sm:$0xff] %vm614_vm2, %v1086_v38  ;;  %v3134_v53 = vpop.f32.mrb[21].mxu1 }
 0x668   : > { %v1089_v54 = vpop.f32.mrb[22].mxu1  ;;  %v1323_v55 = vsel %vm812_vm3, %v4185_v29, -inf }
 0x669   : > { %1100 = vst.msk [vmem:[#allocation2 + $0x38] sm:$0xff] %vm614_vm2, %v1089_v54  ;;  %1324 = vmax.xlane.f32.xlu1 %v1323_v55  ;;  %v3135_v56 = vpop.f32.mrb[23].mxu1 }
 0x66e   : > { %v1199_v57 = vpop.f32.mrb[24].mxu1 }
 0x66f   : > { %v1200_v39 = vadd.f32 %v1199_v57, %v1102_v33  ;;  %v3146_v49 = vpop.f32.mrb[25].mxu1 }
 0x670   : > { %v1202_v58 = vpop.f32.mrb[26].mxu1 }
 0x671   : > { %v1203_v59 = vadd.f32 %v1202_v58, %v1103_v35  ;;  %v3147_v60 = vpop.f32.mrb[27].mxu1  ;;  %v1314_v61 = vsel %vm812_vm3, %v1200_v39, -inf }
 0x672   : > { %1315 = vmax.xlane.f32.xlu0 %v1314_v61 }
 0x673   : > { %v1317_v63 = vsel %vm812_vm3, %v1203_v59, -inf }
 0x676   : > { %1318 = vmax.xlane.f32.xlu0 %v1317_v63  ;;  %v1301_v0 = vpop.f32.mrb[28].mxu1 }
 0x677   : > { %v3158_v1 = vpop.f32.mrb[29].mxu1  ;;  %v1302_v5 = vadd.f32 %v1301_v0, %v1102_v33 }
 0x678   : > { %v1304_v4 = vpop.f32.mrb[30].mxu1 }
 0x679   : > { %v3159_v6 = vpop.f32.mrb[31].mxu1  ;;  %v1326_v8 = vsel %vm812_vm3, %v1302_v5, -inf  ;;  %v4198_v9 = vadd.f32 %v1304_v4, %v1103_v35 }
 0x67a   : > { %1447 = vrot.lane.b32.xlu1 %v4037_v2, %s3703_s11  ;;  %1321 = vmax.xlane.f32.xlu0 %v1320_v7 }
 0x67b   : > { %v1329_v10 = vsel %vm812_vm3, %v4198_v9, -inf }
 0x67e   : > { %1494 = vrot.lane.b32.xlu1 %v4045_v13, %s3703_s11  ;;  %1327 = vmax.xlane.f32.xlu0 %v1326_v8 }
 0x694   : > { %1400 = vrot.lane.b32.xlu0 %v4039_v3, %s3703_s11 }
 0x6a2   : > { %1330 = vmax.xlane.f32.xlu1 %v1329_v10 }
 0x6b3   : > { %1541 = vrot.lane.b32.xlu1 %v4043_v12, %s3703_s11 }
 0x6c1   : > { %v1310_v11 = vpop.xlane.xlu0 %1309 }
 0x6c2   : > { %v1332_v14 = vsub.f32 %v1149_v36, %v1310_v11 }
 0x6c3   : > { %v1313_v15 = vpop.xlane.xlu1 %1312 }
 0x6c4   : > { %v1340_v16 = vmul.f32 1.442695, %v1332_v14  ;;  %v1333_v17 = vsub.f32 %v1152_v42, %v1313_v15 }
 0x6c6   : > { %3436 = vpow2.f32 %v1340_v16  ;;  %v1342_v18 = vmul.f32 1.442695, %v1333_v17 }
 0x6c8   : > { %3438 = vpow2.f32 %v1342_v18 }
 0x6d0   : > { %v4203_v19 = vpop.eup %3436 }
 0x6d1   : > { %v1356_v22 = vsel %vm812_vm3, %v4203_v19, 0.0 }
 0x6d2   : > { %1357 = vadd.xlane.f32.xlu0 %v1356_v22  ;;  %v4207_v23 = vpop.eup %3438 }
 0x6d3   : > { %v1359_v24 = vsel %vm812_vm3, %v4207_v23, 0.0 }
 0x6d7   : > { %1360 = vadd.xlane.f32.xlu1 %v1359_v24 }
 0x6f6   : > { %v1325_v25 = vpop.xlane.xlu1 %1324 }
 0x6f7   : > { %v1337_v30 = vsub.f32 %v4185_v29, %v1325_v25 }
 0x6f9   : > { %v1350_v34 = vmul.f32 1.442695, %v1337_v30 }
 0x6fa   : > { %v1448_v26 = vpop.permute.xlu1 %1447 }
 0x6fb   : > { %3167 = vmatpush3.bf16.msra.mxu1 %v1448_v26 }
 0x6fc   : > { %3178 = vmatprep.subr.bf16.mxu1 %v3697_v48 }
 0x6fe   : > { %v1495_v53 = vpop.permute.xlu1 %1494 }
 0x6ff   : > { %v1316_v27 = vpop.xlane.xlu0 %1315 }
 0x700   : > { %v1334_v20 = vsub.f32 %v1200_v39, %v1316_v27 }
 0x702   : > { %v1344_v31 = vmul.f32 1.442695, %v1334_v20 }
 0x703   : > { %v1319_v32 = vpop.xlane.xlu0 %1318 }
 0x704   : > { %3440 = vpow2.f32 %v1344_v31  ;;  %v1335_v33 = vsub.f32 %v1203_v59, %v1319_v32 }
 0x706   : > { %v1346_v35 = vmul.f32 1.442695, %v1335_v33 }
 0x707   : > { %v1322_v36 = vpop.xlane.xlu0 %1321 }
 0x708   : > { %3442 = vpow2.f32 %v1346_v35  ;;  %v1336_v37 = vsub.f32 %v1251_v62, %v1322_v36 }
 0x709   : > { %3444 = vpow2.f32 %v1350_v34 }
 0x70a   : > { %v1348_v40 = vmul.f32 1.442695, %v1336_v37 }
 0x70b   : > { %v1328_v28 = vpop.xlane.xlu0 %1327 }
 0x70c   : > { %3446 = vpow2.f32 %v1348_v40  ;;  %v1338_v41 = vsub.f32 %v1302_v5, %v1328_v28 }
 0x70e   : > { %v3441_v42 = vpop.eup %3440  ;;  %v1352_v43 = vmul.f32 1.442695, %v1338_v41 }
 0x70f   : > { %v1401_v44 = vpop.permute.xlu0 %1400  ;;  %v1362_v21 = vsel %vm812_vm3, %v3441_v42, 0.0 }
 0x710   : > { %3448 = vpow2.f32 %v1352_v43  ;;  %1363 = vadd.xlane.f32.xlu0 %v1362_v21  ;;  %3161 = vmatpush3.bf16.msra.mxu0 %v1401_v44 }
 0x711   : > { %3172 = vmatprep.subr.bf16.mxu0 %v3697_v48 }
 0x712   : > { %v3443_v45 = vpop.eup %3442 }
 0x713   : > { %v1365_v46 = vsel %vm812_vm3, %v3443_v45, 0.0  ;;  %v3445_v47 = vpop.eup %3444 }
 0x714   : > { %1366 = vadd.xlane.f32.xlu1 %v1365_v46  ;;  %v1371_v29 = vsel %vm812_vm3, %v3445_v47, 0.0 }
 0x716   : > { %v3447_v50 = vpop.eup %3446 }
 0x717   : > { %v1368_v51 = vsel %vm812_vm3, %v3447_v50, 0.0 }
 0x718   : > { %1369 = vadd.xlane.f32.xlu0 %v1368_v51  ;;  %1372 = vadd.xlane.f32.xlu1 %v1371_v29 }
 0x71a   : > { %v4218_v38 = vpop.eup %3448 }
 0x71b   : > { %v1374_v52 = vsel %vm812_vm3, %v4218_v38, 0.0 }
 0x71c   : > { %1375 = vadd.xlane.f32.xlu0 %v1374_v52 }
 0x729   : > { %1685 = vrot.lane.b32.xlu1 %v4037_v2, %s3704_s13 }
 0x72f   : > { %v1331_v54 = vpop.xlane.xlu1 %1330 }
 0x730   : > { %v1339_v55 = vsub.f32 %v4198_v9, %v1331_v54 }
 0x732   : > { %1634 = vrot.lane.b32.xlu0 %v4039_v3, %s3704_s13  ;;  %v1354_v56 = vmul.f32 1.442695, %v1339_v55  ;;  %v1631_v55 = vld [vmem:[#allocation8 + $0x28] sm:$0xff] }
 0x733   : > { %v1542_v49 = vpop.permute.xlu1 %1541 }
 0x734   : > { %3450 = vpow2.f32 %v1354_v56 }
 0x736   : > { %1632 = vrot.lane.b32.xlu0 %v4039_v3, %s3705_s10 }
 0x73a   : > { %1683 = vrot.lane.b32.xlu0 %v4037_v2, %s3705_s10 }
 0x73e   : > { %1734 = vrot.lane.b32.xlu0 %v4045_v13, %s3705_s10  ;;  %v4228_v57 = vpop.eup %3450 }
 0x73f   : > { %v1377_v39 = vsel %vm812_vm3, %v4228_v57, 0.0 }
 0x74d   : > { %1378 = vadd.xlane.f32.xlu1 %v1377_v39 }
 0x75e   : > { %1736 = vrot.lane.b32.xlu1 %v4045_v13, %s3704_s13 }
 0x75f   : > { %v1358_v58 = vpop.xlane.xlu0 %1357 }
 0x760   : > { %3452 = vrcp.f32 %v1358_v58 }
 0x762   : > { %1787 = vrot.lane.b32.xlu1 %v4043_v12, %s3704_s13 }
 0x764   : > { %v1361_v59 = vpop.xlane.xlu1 %1360 }
 0x765   : > { %3454 = vrcp.f32 %v1361_v59 }
 0x766   : > { %1785 = vrot.lane.b32.xlu1 %v4043_v12, %s3705_s10  ;;  %s3713_s10 = smov [#allocation9]  }
 0x76a   : > { %v3453_v60 = vpop.eup %3452 }
 0x76b   : > { %v1388_v62 = vmul.f32 %v3453_v60, %v4203_v19 }
 0x76f   : > { %v3455_v61 = vpop.eup %3454 }
 0x770   : > { %v1389_v63 = vmul.f32 %v3455_v61, %v4207_v23 }
 0x772   : > { %v1396_v0 = vpack.c.bf16 %v1389_v63, %v1388_v62 }
 0x774   : > { %3163 = vmatmul.mubr.msk.bf16.vlgmr.msra.gmra.mrb[24].mxu0 %vm812_vm3, %v1396_v0 }
 0x775   : > { %3173 = vmatpush3.bf16.msra.mxu0 %v1495_v53  ;;  %3174 = vmatprep.mubr.msk.bf16.mxu0 %vm3698_vm1, %v3697_v48  ;;  %v1630_v53 = vld [vmem:[#allocation8 + $0x20] sm:$0xff] }
 0x776   : > { %3184 = vmatprep.subr.bf16.mxu0 %v3697_v48 }
 0x79d   : > { %v1364_v1 = vpop.xlane.xlu0 %1363 }
 0x79e   : > { %3456 = vrcp.f32 %v1364_v1 }
 0x7a1   : > { %v1367_v4 = vpop.xlane.xlu1 %1366 }
 0x7a2   : > { %3458 = vrcp.f32 %v1367_v4 }
 0x7a5   : > { %v1370_v5 = vpop.xlane.xlu0 %1369  ;;  %v1373_v6 = vpop.xlane.xlu1 %1372 }
 0x7a6   : > { %3460 = vrcp.f32 %v1370_v5 }
 0x7a7   : > { %3462 = vrcp.f32 %v1373_v6 }
 0x7a8   : > { %v3457_v7 = vpop.eup %3456 }
 0x7a9   : > { %v1390_v9 = vmul.f32 %v3457_v7, %v3441_v42  ;;  %v1376_v11 = vpop.xlane.xlu0 %1375  ;;  %v1686_v25 = vpop.permute.xlu1 %1685 }
 0x7aa   : > { %3464 = vrcp.f32 %v1376_v11  ;;  %v1691_v37 = vsel %vm614_vm2, %v1686_v25, 0 }
 0x7ac   : > { %v3459_v8 = vpop.eup %3458 }
 0x7ad   : > { %v1391_v10 = vmul.f32 %v3459_v8, %v3443_v45  ;;  %v1635_v19 = vpop.permute.xlu0 %1634 }
 0x7ae   : > { %v1640_v23 = vsel %vm614_vm2, %v1635_v19, 0 }
 0x7af   : > { %v1397_v14 = vpack.c.bf16 %v1391_v10, %v1390_v9 }
 0x7b0   : > { %v3461_v15 = vpop.eup %3460 }
 0x7b1   : > { %v3463_v16 = vpop.eup %3462  ;;  %v1392_v17 = vmul.f32 %v3461_v15, %v3447_v50  ;;  %3169 = vmatmul.mubr.msk.bf16.vlgmr.msra.gmra.mrb[32].mxu1 %vm812_vm3, %v1397_v14  ;;  %v1633_v24 = vpop.permute.xlu0 %1632 }
 0x7b2   : > { %v1393_v18 = vmul.f32 %v3463_v16, %v3445_v47  ;;  %3179 = vmatpush3.bf16.msra.mxu1 %v1542_v49  ;;  %3180 = vmatprep.mubr.msk.bf16.mxu1 %vm3698_vm1, %v3697_v48 }
 0x7b3   : > { %3190 = vmatprep.subr.bf16.mxu1 %v3697_v48 }
 0x7b4   : > { %v1398_v22 = vpack.c.bf16 %v1393_v18, %v1392_v17  ;;  %v3465_v31 = vpop.eup %3464 }
 0x7b5   : > { %v1684_v30 = vpop.permute.xlu0 %1683  ;;  %v1394_v33 = vmul.f32 %v3465_v31, %v4218_v38 }
 0x7b6   : > { %3175 = vmatmul.mubr.msk.bf16.vlgmr.msra.gmra.mrb[28].mxu0 %vm812_vm3, %v1398_v22 }
 0x7b7   : > { %3185 = vmatpush3.bf16.xpose.msra.mxu0 %v1640_v23  ;;  %3186 = vmatprep.mubr.msk.bf16.mxu0 %vm3698_vm1, %v3697_v48 }
 0x7b8   : > { %3196 = vmatprep.subr.bf16.mxu0 %v3697_v48 }
 0x7b9   : > { %v1735_v34 = vpop.permute.xlu0 %1734 }
 0x7be   : > { %3187 = vmatmul.mubr.msk.bf16.vlgmr.msra.gmra.mrb[32].mxu0 %vm614_vm2, %v1633_v24 }
 0x7bf   : > { %3198 = vmatprep.mubr.msk.bf16.mxu0 %vm3698_vm1, %v3697_v48 }
 0x7da   : > { %v1379_v26 = vpop.xlane.xlu1 %1378 }
 0x7db   : > { %3466 = vrcp.f32 %v1379_v26 }
 0x7de   : > { %v1737_v27 = vpop.permute.xlu1 %1736 }
 0x7df   : > { %v1742_v20 = vsel %vm614_vm2, %v1737_v27, 0 }
 0x7e0   : > { %3197 = vmatpush3.bf16.xpose.msra.mxu0 %v1742_v20 }
 0x7e1   : > { %3208 = vmatprep.subr.bf16.mxu0 %v3697_v48 }
 0x7e2   : > { %v1788_v40 = vpop.permute.xlu1 %1787 }
 0x7e3   : > { %v1793_v28 = vsel %vm614_vm2, %v1788_v40, 0 }
 0x7e5   : > { %v3467_v32 = vpop.eup %3466 }
 0x7e6   : > { %v1395_v35 = vmul.f32 %v3467_v32, %v4228_v57  ;;  %v1786_v41 = vpop.permute.xlu1 %1785 }
 0x7e7   : > { %3199 = vmatmul.mubr.msk.bf16.vlgmr.msra.gmra.mrb[36].mxu0 %vm614_vm2, %v1735_v34 }
 0x7e8   : > { %v1399_v36 = vpack.c.bf16 %v1395_v35, %v1394_v33  ;;  %3210 = vmatprep.mubr.msk.bf16.mxu0 %vm3698_vm1, %v3697_v48 }
 0x7ea   : > { %3181 = vmatmul.mubr.msk.bf16.vlgmr.msra.gmra.mrb[36].mxu1 %vm812_vm3, %v1399_v36 }
 0x7eb   : > { %3191 = vmatpush3.bf16.xpose.msra.mxu1 %v1691_v37  ;;  %3192 = vmatprep.mubr.msk.bf16.mxu1 %vm3698_vm1, %v3697_v48 }
 0x7ec   : > { %3202 = vmatprep.subr.bf16.mxu1 %v3697_v48 }
 0x7f2   : > { %3193 = vmatmul.mubr.msk.bf16.vlgmr.msra.gmra.mrb[40].mxu1 %vm614_vm2, %v1684_v30 }
 0x7f3   : > { %3203 = vmatpush3.bf16.xpose.msra.mxu1 %v1793_v28  ;;  %3204 = vmatprep.mubr.msk.bf16.mxu1 %vm3698_vm1, %v3697_v48 }
 0x7f4   : > { %3214 = vmatprep.subr.bf16.mxu1 %v3697_v48 }
 0x7fa   : > { %3205 = vmatmul.mubr.msk.bf16.vlgmr.msra.gmra.mrb[44].mxu1 %vm614_vm2, %v1786_v41 }
 0x7fb   : > { %3216 = vmatprep.mubr.msk.bf16.mxu1 %vm3698_vm1, %v3697_v48 }
 0x847   : > { %v4273_v42 = vpop.f32.mrb[24].mxu0 }
 0x848   : > { %v3164_v43 = vpop.f32.mrb[25].mxu0 }
 0x849   : > { %v4275_v44 = vpop.f32.mrb[26].mxu0 }
 0x84a   : > { %v3165_v21 = vpop.f32.mrb[27].mxu0 }
 0x884   : > { %v4277_v45 = vpop.f32.mrb[32].mxu1 }
 0x885   : > { %v3170_v46 = vpop.f32.mrb[33].mxu1 }
 0x886   : > { %v4279_v47 = vpop.f32.mrb[34].mxu1 }
 0x887   : > { %v3171_v50 = vpop.f32.mrb[35].mxu1 }
 0x889   : > { %v4281_v51 = vpop.f32.mrb[28].mxu0 }
 0x88a   : > { %v3176_v29 = vpop.f32.mrb[29].mxu0 }
 0x88b   : > { %v4283_v38 = vpop.f32.mrb[30].mxu0 }
 0x88c   : > { %v3177_v52 = vpop.f32.mrb[31].mxu0 }
 0x891   : > { %v1676_v54 = vpop.f32.mrb[32].mxu0 }
 0x892   : > { %v1677_v56 = vadd.f32 %v1676_v54, %v1630_v53  ;;  %v3188_v57 = vpop.f32.mrb[33].mxu0 }
 0x893   : > { %v1679_v39 = vpop.f32.mrb[34].mxu0 }
 0x894   : > { %v1680_v49 = vadd.f32 %v1679_v39, %v1631_v55  ;;  %v3189_v58 = vpop.f32.mrb[35].mxu0  ;;  %v1836_v59 = vsel %vm812_vm3, %v1677_v56, -inf }
 0x895   : > { %1837 = vmax.xlane.f32.xlu0 %v1836_v59 }
 0x896   : > { %v1839_v60 = vsel %vm812_vm3, %v1680_v49, -inf }
 0x897   : > { %1840 = vmax.xlane.f32.xlu1 %v1839_v60 }
 0x8ba   : > { %v1778_v61 = vpop.f32.mrb[36].mxu0 }
 0x8bb   : > { %v3200_v62 = vpop.f32.mrb[37].mxu0  ;;  %v1779_v18 = vadd.f32 %v1778_v61, %v1630_v53 }
 0x8bc   : > { %v1781_v63 = vpop.f32.mrb[38].mxu0 }
 0x8bd   : > { %v1782_v0 = vadd.f32 %v1781_v63, %v1631_v55  ;;  %v4287_v1 = vpop.f32.mrb[36].mxu1  ;;  %v3201_v4 = vpop.f32.mrb[39].mxu0  ;;  %v1848_v20 = vsel %vm812_vm3, %v1779_v18, -inf }
 0x8be   : > { %v3182_v5 = vpop.f32.mrb[37].mxu1 }
 0x8bf   : > { %v4289_v6 = vpop.f32.mrb[38].mxu1  ;;  %v1851_v7 = vsel %vm812_vm3, %v1782_v0, -inf }
 0x8c0   : > { %1852 = vmax.xlane.f32.xlu1 %v1851_v7  ;;  %v3183_v8 = vpop.f32.mrb[39].mxu1 }
 0x8c5   : > { %v1727_v9 = vpop.f32.mrb[40].mxu1 }
 0x8c6   : > { %v1728_v10 = vadd.f32 %v1727_v9, %v1630_v53  ;;  %v3194_v11 = vpop.f32.mrb[41].mxu1 }
 0x8c7   : > { %v1730_v14 = vpop.f32.mrb[42].mxu1 }
 0x8c8   : > { %v1731_v15 = vadd.f32 %v1730_v14, %v1631_v55  ;;  %v3195_v16 = vpop.f32.mrb[43].mxu1  ;;  %v1842_v17 = vsel %vm812_vm3, %v1728_v10, -inf }
 0x8c9   : > { %1843 = vmax.xlane.f32.xlu0 %v1842_v17 }
 0x8ca   : > { %v1845_v19 = vsel %vm812_vm3, %v1731_v15, -inf }
 0x8cd   : > { %1846 = vmax.xlane.f32.xlu0 %v1845_v19  ;;  %v1829_v22 = vpop.f32.mrb[44].mxu1 }
 0x8ce   : > { %v1830_v23 = vadd.f32 %v1829_v22, %v1630_v53  ;;  %v3206_v24 = vpop.f32.mrb[45].mxu1 }
 0x8cf   : > { %v1832_v25 = vpop.f32.mrb[46].mxu1 }
 0x8d0   : > { %v4294_v26 = vadd.f32 %v1832_v25, %v1631_v55  ;;  %v3207_v27 = vpop.f32.mrb[47].mxu1  ;;  %v1854_v30 = vsel %vm812_vm3, %v1830_v23, -inf }
 0x8d1   : > { %1975 = vrot.lane.b32.xlu1 %v4037_v2, %s3706_s17  ;;  %1849 = vmax.xlane.f32.xlu0 %v1848_v20 }
 0x8d2   : > { %v1857_v31 = vsel %vm812_vm3, %v4294_v26, -inf }
 0x8d5   : > { %2022 = vrot.lane.b32.xlu1 %v4045_v13, %s3706_s17  ;;  %1855 = vmax.xlane.f32.xlu0 %v1854_v30 }
 0x8eb   : > { %1928 = vrot.lane.b32.xlu0 %v4039_v3, %s3706_s17 }
 0x8f9   : > { %1858 = vmax.xlane.f32.xlu1 %v1857_v31 }
 0x90a   : > { %2069 = vrot.lane.b32.xlu1 %v4043_v12, %s3706_s17  ;;  %s3712_s17 = smov 24  }
 0x922   : > { %v1838_v32 = vpop.xlane.xlu0 %1837 }
 0x923   : > { %v1860_v33 = vsub.f32 %v1677_v56, %v1838_v32 }
 0x924   : > { %v1841_v34 = vpop.xlane.xlu1 %1840 }
 0x925   : > { %v1868_v35 = vmul.f32 1.442695, %v1860_v33  ;;  %v1861_v36 = vsub.f32 %v1680_v49, %v1841_v34 }
 0x927   : > { %3468 = vpow2.f32 %v1868_v35  ;;  %v1870_v37 = vmul.f32 1.442695, %v1861_v36 }
 0x929   : > { %3470 = vpow2.f32 %v1870_v37 }
 0x931   : > { %v4304_v40 = vpop.eup %3468 }
 0x932   : > { %v1884_v28 = vsel %vm812_vm3, %v4304_v40, 0.0 }
 0x933   : > { %v4308_v41 = vpop.eup %3470  ;;  %1885 = vadd.xlane.f32.xlu0 %v1884_v28 }
 0x934   : > { %v1887_v43 = vsel %vm812_vm3, %v4308_v41, 0.0 }
 0x935   : > { %1888 = vadd.xlane.f32.xlu1 %v1887_v43 }
 0x94d   : > { %v1853_v21 = vpop.xlane.xlu1 %1852 }
 0x94e   : > { %v1865_v52 = vsub.f32 %v1782_v0, %v1853_v21 }
 0x950   : > { %v1878_v56 = vmul.f32 1.442695, %v1865_v52 }
 0x951   : > { %v1976_v46 = vpop.permute.xlu1 %1975 }
 0x952   : > { %3215 = vmatpush3.bf16.msra.mxu1 %v1976_v46 }
 0x953   : > { %3226 = vmatprep.subr.bf16.mxu1 %v3697_v48 }
 0x956   : > { %v1844_v50 = vpop.xlane.xlu0 %1843 }
 0x957   : > { %v1862_v29 = vsub.f32 %v1728_v10, %v1844_v50 }
 0x959   : > { %v1872_v53 = vmul.f32 1.442695, %v1862_v29 }
 0x95a   : > { %v1847_v54 = vpop.xlane.xlu0 %1846 }
 0x95b   : > { %3472 = vpow2.f32 %v1872_v53  ;;  %v1863_v55 = vsub.f32 %v1731_v15, %v1847_v54  ;;  %v2023_v15 = vpop.permute.xlu1 %2022 }
 0x95d   : > { %v1874_v57 = vmul.f32 1.442695, %v1863_v55 }
 0x95e   : > { %v1850_v39 = vpop.xlane.xlu0 %1849 }
 0x95f   : > { %3474 = vpow2.f32 %v1874_v57  ;;  %v1864_v49 = vsub.f32 %v1779_v18, %v1850_v39 }
 0x960   : > { %3476 = vpow2.f32 %v1878_v56 }
 0x961   : > { %v1876_v58 = vmul.f32 1.442695, %v1864_v49 }
 0x962   : > { %v1856_v59 = vpop.xlane.xlu0 %1855 }
 0x963   : > { %3478 = vpow2.f32 %v1876_v58  ;;  %v1866_v60 = vsub.f32 %v1830_v23, %v1856_v59 }
 0x965   : > { %v3473_v61 = vpop.eup %3472  ;;  %v1880_v62 = vmul.f32 1.442695, %v1866_v60 }
 0x966   : > { %v1929_v63 = vpop.permute.xlu0 %1928  ;;  %v1890_v4 = vsel %vm812_vm3, %v3473_v61, 0.0 }
 0x967   : > { %3480 = vpow2.f32 %v1880_v62  ;;  %1891 = vadd.xlane.f32.xlu0 %v1890_v4  ;;  %3209 = vmatpush3.bf16.msra.mxu0 %v1929_v63 }
 0x968   : > { %3220 = vmatprep.subr.bf16.mxu0 %v3697_v48 }
 0x969   : > { %v3475_v0 = vpop.eup %3474 }
 0x96a   : > { %v1893_v5 = vsel %vm812_vm3, %v3475_v0, 0.0  ;;  %v3477_v7 = vpop.eup %3476 }
 0x96b   : > { %1894 = vadd.xlane.f32.xlu1 %v1893_v5  ;;  %v1899_v10 = vsel %vm812_vm3, %v3477_v7, 0.0 }
 0x96d   : > { %v3479_v8 = vpop.eup %3478 }
 0x96e   : > { %v1896_v9 = vsel %vm812_vm3, %v3479_v8, 0.0 }
 0x96f   : > { %1897 = vadd.xlane.f32.xlu0 %v1896_v9  ;;  %1900 = vadd.xlane.f32.xlu1 %v1899_v10 }
 0x971   : > { %v4318_v11 = vpop.eup %3480 }
 0x972   : > { %v1902_v14 = vsel %vm812_vm3, %v4318_v11, 0.0 }
 0x973   : > { %1903 = vadd.xlane.f32.xlu0 %v1902_v14 }
 0x980   : > { %2213 = vrot.lane.b32.xlu1 %v4037_v2, %s3707_s21 }
 0x986   : > { %v1859_v16 = vpop.xlane.xlu1 %1858 }
 0x987   : > { %v1867_v17 = vsub.f32 %v4294_v26, %v1859_v16 }
 0x989   : > { %2162 = vrot.lane.b32.xlu0 %v4039_v3, %s3707_s21  ;;  %v1882_v18 = vmul.f32 1.442695, %v1867_v17 }
 0x98a   : > { %v2070_v23 = vpop.permute.xlu1 %2069 }
 0x98b   : > { %3482 = vpow2.f32 %v1882_v18 }
 0x98d   : > { %2160 = vrot.lane.b32.xlu0 %v4039_v3, %s3708_s18 }
 0x991   : > { %2211 = vrot.lane.b32.xlu0 %v4037_v2, %s3708_s18 }
 0x995   : > { %2262 = vrot.lane.b32.xlu0 %v4045_v13, %s3708_s18  ;;  %v4328_v19 = vpop.eup %3482 }
 0x996   : > { %v1905_v22 = vsel %vm812_vm3, %v4328_v19, 0.0 }
 0x9a4   : > { %1906 = vadd.xlane.f32.xlu1 %v1905_v22 }
 0x9b5   : > { %2264 = vrot.lane.b32.xlu1 %v4045_v13, %s3707_s21 }
 0x9b9   : > { %2315 = vrot.lane.b32.xlu1 %v4043_v12, %s3707_s21 }
 0x9bd   : > { %2313 = vrot.lane.b32.xlu1 %v4043_v12, %s3708_s18 }
 0x9c0   : > { %v1886_v24 = vpop.xlane.xlu0 %1885 }
 0x9c1   : > { %3484 = vrcp.f32 %v1886_v24 }
 0x9c2   : > { %v1889_v25 = vpop.xlane.xlu1 %1888 }
 0x9c3   : > { %3486 = vrcp.f32 %v1889_v25  ;;  %v2158_v25 = vld [vmem:[#allocation8 + $0x30] sm:$0xff] }
 0x9cb   : > { %v3485_v26 = vpop.eup %3484 }
 0x9cc   : > { %v1916_v20 = vmul.f32 %v3485_v26, %v4304_v40 }
 0x9cd   : > { %v3487_v27 = vpop.eup %3486 }
 0x9ce   : > { %v1917_v30 = vmul.f32 %v3487_v27, %v4308_v41  ;;  %v2159_v27 = vld [vmem:[#allocation8 + $0x38] sm:$0xff] }
 0x9d0   : > { %v1924_v31 = vpack.c.bf16 %v1917_v30, %v1916_v20 }
 0x9d2   : > { %3211 = vmatmul.mubr.msk.bf16.vlgmr.msra.gmra.mrb[40].mxu0 %vm812_vm3, %v1924_v31 }
 0x9d3   : > { %3221 = vmatpush3.bf16.msra.mxu0 %v2023_v15  ;;  %3222 = vmatprep.mubr.msk.bf16.mxu0 %vm3698_vm1, %v3697_v48 }
 0x9d4   : > { %3232 = vmatprep.subr.bf16.mxu0 %v3697_v48 }
 0x9f4   : > { %v1892_v32 = vpop.xlane.xlu0 %1891 }
 0x9f5   : > { %3488 = vrcp.f32 %v1892_v32 }
 0x9f8   : > { %v1895_v33 = vpop.xlane.xlu1 %1894 }
 0x9f9   : > { %3490 = vrcp.f32 %v1895_v33 }
 0x9fc   : > { %v1898_v34 = vpop.xlane.xlu0 %1897  ;;  %v1901_v35 = vpop.xlane.xlu1 %1900 }
 0x9fd   : > { %3492 = vrcp.f32 %v1898_v34 }
 0x9fe   : > { %3494 = vrcp.f32 %v1901_v35 }
 0x9ff   : > { %v3489_v36 = vpop.eup %3488 }
 0xa00   : > { %v1918_v40 = vmul.f32 %v3489_v36, %v3473_v61  ;;  %v1904_v41 = vpop.xlane.xlu0 %1903  ;;  %v2214_v56 = vpop.permute.xlu1 %2213 }
 0xa01   : > { %3496 = vrcp.f32 %v1904_v41 }
 0xa03   : > { %v3491_v37 = vpop.eup %3490 }
 0xa04   : > { %v1919_v28 = vmul.f32 %v3491_v37, %v3475_v0  ;;  %v2163_v52 = vpop.permute.xlu0 %2162  ;;  %v2219_v0 = vsel %vm614_vm2, %v2214_v56, 0 }
 0xa05   : > { %v2168_v54 = vsel %vm614_vm2, %v2163_v52, 0 }
 0xa06   : > { %v1925_v43 = vpack.c.bf16 %v1919_v28, %v1918_v40 }
 0xa07   : > { %v3493_v21 = vpop.eup %3492 }
 0xa08   : > { %v3495_v46 = vpop.eup %3494  ;;  %v1920_v50 = vmul.f32 %v3493_v21, %v3479_v8  ;;  %3217 = vmatmul.mubr.msk.bf16.vlgmr.msra.gmra.mrb[48].mxu1 %vm812_vm3, %v1925_v43  ;;  %v2161_v55 = vpop.permute.xlu0 %2160 }
 0xa09   : > { %v1921_v29 = vmul.f32 %v3495_v46, %v3477_v7  ;;  %3227 = vmatpush3.bf16.msra.mxu1 %v2070_v23  ;;  %3228 = vmatprep.mubr.msk.bf16.mxu1 %vm3698_vm1, %v3697_v48 }
 0xa0a   : > { %3238 = vmatprep.subr.bf16.mxu1 %v3697_v48 }
 0xa0b   : > { %v1926_v53 = vpack.c.bf16 %v1921_v29, %v1920_v50  ;;  %v3497_v59 = vpop.eup %3496 }
 0xa0c   : > { %v2212_v58 = vpop.permute.xlu0 %2211  ;;  %v1922_v61 = vmul.f32 %v3497_v59, %v4318_v11 }
 0xa0d   : > { %3223 = vmatmul.mubr.msk.bf16.vlgmr.msra.gmra.mrb[44].mxu0 %vm812_vm3, %v1926_v53 }
 0xa0e   : > { %3233 = vmatpush3.bf16.xpose.msra.mxu0 %v2168_v54  ;;  %3234 = vmatprep.mubr.msk.bf16.mxu0 %vm3698_vm1, %v3697_v48 }
 0xa0f   : > { %3244 = vmatprep.subr.bf16.mxu0 %v3697_v48 }
 0xa10   : > { %v2263_v62 = vpop.permute.xlu0 %2262 }
 0xa15   : > { %3235 = vmatmul.mubr.msk.bf16.vlgmr.msra.gmra.mrb[48].mxu0 %vm614_vm2, %v2161_v55 }
 0xa16   : > { %3246 = vmatprep.mubr.msk.bf16.mxu0 %vm3698_vm1, %v3697_v48 }
 0xa31   : > { %v1907_v57 = vpop.xlane.xlu1 %1906 }
 0xa32   : > { %3498 = vrcp.f32 %v1907_v57 }
 0xa35   : > { %v2265_v39 = vpop.permute.xlu1 %2264 }
 0xa36   : > { %v2270_v49 = vsel %vm614_vm2, %v2265_v39, 0 }
 0xa37   : > { %3245 = vmatpush3.bf16.xpose.msra.mxu0 %v2270_v49 }
 0xa38   : > { %3256 = vmatprep.subr.bf16.mxu0 %v3697_v48 }
 0xa39   : > { %v2316_v5 = vpop.permute.xlu1 %2315 }
 0xa3a   : > { %v2321_v7 = vsel %vm614_vm2, %v2316_v5, 0 }
 0xa3c   : > { %v3499_v60 = vpop.eup %3498 }
 0xa3d   : > { %v1923_v63 = vmul.f32 %v3499_v60, %v4328_v19  ;;  %v2314_v8 = vpop.permute.xlu1 %2313 }
 0xa3e   : > { %3247 = vmatmul.mubr.msk.bf16.vlgmr.msra.gmra.mrb[52].mxu0 %vm614_vm2, %v2263_v62 }
 0xa3f   : > { %v1927_v4 = vpack.c.bf16 %v1923_v63, %v1922_v61  ;;  %3258 = vmatprep.mubr.msk.bf16.mxu0 %vm3698_vm1, %v3697_v48 }
 0xa41   : > { %3229 = vmatmul.mubr.msk.bf16.vlgmr.msra.gmra.mrb[52].mxu1 %vm812_vm3, %v1927_v4 }
 0xa42   : > { %3239 = vmatpush3.bf16.xpose.msra.mxu1 %v2219_v0  ;;  %3240 = vmatprep.mubr.msk.bf16.mxu1 %vm3698_vm1, %v3697_v48 }
 0xa43   : > { %3250 = vmatprep.subr.bf16.mxu1 %v3697_v48 }
 0xa49   : > { %3241 = vmatmul.mubr.msk.bf16.vlgmr.msra.gmra.mrb[56].mxu1 %vm614_vm2, %v2212_v58 }
 0xa4a   : > { %3251 = vmatpush3.bf16.xpose.msra.mxu1 %v2321_v7  ;;  %3252 = vmatprep.mubr.msk.bf16.mxu1 %vm3698_vm1, %v3697_v48 }
 0xa4b   : > { %3262 = vmatprep.subr.bf16.mxu1 %v3697_v48 }
 0xa51   : > { %3253 = vmatmul.mubr.msk.bf16.vlgmr.msra.gmra.mrb[60].mxu1 %vm614_vm2, %v2314_v8 }
 0xa52   : > { %3264 = vmatprep.mubr.msk.bf16.mxu1 %vm3698_vm1, %v3697_v48 }
 0xaa5   : > { %v4373_v9 = vpop.f32.mrb[40].mxu0 }
 0xaa6   : > { %v3212_v10 = vpop.f32.mrb[41].mxu0 }
 0xaa7   : > { %v4375_v11 = vpop.f32.mrb[42].mxu0 }
 0xaa8   : > { %v3213_v14 = vpop.f32.mrb[43].mxu0 }
 0xadb   : > { %v4377_v15 = vpop.f32.mrb[48].mxu1 }
 0xadc   : > { %v3218_v16 = vpop.f32.mrb[49].mxu1 }
 0xadd   : > { %v4379_v17 = vpop.f32.mrb[50].mxu1 }
 0xade   : > { %v3219_v18 = vpop.f32.mrb[51].mxu1 }
 0xae0   : > { %v4381_v19 = vpop.f32.mrb[44].mxu0 }
 0xae1   : > { %v3224_v22 = vpop.f32.mrb[45].mxu0 }
 0xae2   : > { %v4383_v23 = vpop.f32.mrb[46].mxu0 }
 0xae3   : > { %v3225_v24 = vpop.f32.mrb[47].mxu0 }
 0xae8   : > { %v2204_v26 = vpop.f32.mrb[48].mxu0 }
 0xae9   : > { %v2205_v20 = vadd.f32 %v2204_v26, %v2158_v25  ;;  %v3236_v30 = vpop.f32.mrb[49].mxu0 }
 0xaea   : > { %v2207_v31 = vpop.f32.mrb[50].mxu0 }
 0xaeb   : > { %v2208_v32 = vadd.f32 %v2207_v31, %v2159_v27  ;;  %v3237_v33 = vpop.f32.mrb[51].mxu0  ;;  %v2364_v34 = vsel %vm812_vm3, %v2205_v20, -inf }
 0xaec   : > { %2365 = vmax.xlane.f32.xlu0 %v2364_v34 }
 0xaed   : > { %v2367_v35 = vsel %vm812_vm3, %v2208_v32, -inf }
 0xaee   : > { %2368 = vmax.xlane.f32.xlu1 %v2367_v35 }
 0xb11   : > { %v2306_v36 = vpop.f32.mrb[52].mxu0 }
 0xb12   : > { %v3248_v37 = vpop.f32.mrb[53].mxu0  ;;  %v2307_v49 = vadd.f32 %v2306_v36, %v2158_v25 }
 0xb13   : > { %v2309_v40 = vpop.f32.mrb[54].mxu0 }
 0xb14   : > { %v2310_v28 = vadd.f32 %v2309_v40, %v2159_v27  ;;  %v4387_v41 = vpop.f32.mrb[52].mxu1  ;;  %v3249_v43 = vpop.f32.mrb[55].mxu0  ;;  %v2376_v0 = vsel %vm812_vm3, %v2307_v49, -inf }
 0xb15   : > { %v3230_v21 = vpop.f32.mrb[53].mxu1 }
 0xb16   : > { %v4389_v46 = vpop.f32.mrb[54].mxu1  ;;  %v2379_v50 = vsel %vm812_vm3, %v2310_v28, -inf }
 0xb17   : > { %2380 = vmax.xlane.f32.xlu1 %v2379_v50  ;;  %v3231_v29 = vpop.f32.mrb[55].mxu1 }
 0xb1c   : > { %v2255_v52 = vpop.f32.mrb[56].mxu1 }
 0xb1d   : > { %v2256_v53 = vadd.f32 %v2255_v52, %v2158_v25  ;;  %v3242_v54 = vpop.f32.mrb[57].mxu1 }
 0xb1e   : > { %v2258_v55 = vpop.f32.mrb[58].mxu1 }
 0xb1f   : > { %v2259_v56 = vadd.f32 %v2258_v55, %v2159_v27  ;;  %v3243_v57 = vpop.f32.mrb[59].mxu1  ;;  %v2370_v39 = vsel %vm812_vm3, %v2256_v53, -inf }
 0xb20   : > { %2371 = vmax.xlane.f32.xlu0 %v2370_v39 }
 0xb21   : > { %v2373_v58 = vsel %vm812_vm3, %v2259_v56, -inf }
 0xb24   : > { %2374 = vmax.xlane.f32.xlu0 %v2373_v58  ;;  %v2357_v59 = vpop.f32.mrb[60].mxu1 }
 0xb25   : > { %v2358_v60 = vadd.f32 %v2357_v59, %v2158_v25  ;;  %v3254_v61 = vpop.f32.mrb[61].mxu1 }
 0xb26   : > { %v2360_v62 = vpop.f32.mrb[62].mxu1 }
 0xb27   : > { %v4394_v63 = vadd.f32 %v2360_v62, %v2159_v27  ;;  %v3255_v4 = vpop.f32.mrb[63].mxu1  ;;  %v2382_v7 = vsel %vm812_vm3, %v2358_v60, -inf }
 0xb28   : > { %2377 = vmax.xlane.f32.xlu0 %v2376_v0 }
 0xb29   : > { %v2385_v5 = vsel %vm812_vm3, %v4394_v63, -inf }
 0xb2a   : > { %2386 = vmax.xlane.f32.xlu1 %v2385_v5 }
 0xb2c   : > { %2383 = vmax.xlane.f32.xlu0 %v2382_v7 }
 0xb79   : > { %v2366_v8 = vpop.xlane.xlu0 %2365 }
 0xb7a   : > { %v2388_v10 = vsub.f32 %v2205_v20, %v2366_v8 }
 0xb7b   : > { %v2369_v14 = vpop.xlane.xlu1 %2368 }
 0xb7c   : > { %v2396_v16 = vmul.f32 1.442695, %v2388_v10  ;;  %v2389_v18 = vsub.f32 %v2208_v32, %v2369_v14 }
 0xb7e   : > { %3500 = vpow2.f32 %v2396_v16  ;;  %v2398_v22 = vmul.f32 1.442695, %v2389_v18 }
 0xb80   : > { %3502 = vpow2.f32 %v2398_v22 }
 0xb88   : > { %v4400_v24 = vpop.eup %3500 }
 0xb89   : > { %v2412_v25 = vsel %vm812_vm3, %v4400_v24, 0.0 }
 0xb8a   : > { %v4404_v26 = vpop.eup %3502  ;;  %2413 = vadd.xlane.f32.xlu0 %v2412_v25 }
 0xb8b   : > { %v2415_v27 = vsel %vm812_vm3, %v4404_v26, 0.0 }
 0xb8c   : > { %2416 = vadd.xlane.f32.xlu1 %v2415_v27 }
 0xba4   : > { %v2381_v30 = vpop.xlane.xlu1 %2380 }
 0xba5   : > { %v2393_v33 = vsub.f32 %v2310_v28, %v2381_v30 }
 0xba7   : > { %v2406_v36 = vmul.f32 1.442695, %v2393_v33 }
 0xbad   : > { %v2372_v20 = vpop.xlane.xlu0 %2371 }
 0xbae   : > { %v2390_v31 = vsub.f32 %v2256_v53, %v2372_v20 }
 0xbb0   : > { %v2400_v32 = vmul.f32 1.442695, %v2390_v31 }
 0xbb1   : > { %v2375_v34 = vpop.xlane.xlu0 %2374 }
 0xbb2   : > { %3504 = vpow2.f32 %v2400_v32  ;;  %v2391_v35 = vsub.f32 %v2259_v56, %v2375_v34 }
 0xbb4   : > { %v2402_v37 = vmul.f32 1.442695, %v2391_v35 }
 0xbb5   : > { %v2378_v40 = vpop.xlane.xlu0 %2377 }
 0xbb6   : > { %3506 = vpow2.f32 %v2402_v37  ;;  %v2392_v43 = vsub.f32 %v2307_v49, %v2378_v40 }
 0xbb7   : > { %3508 = vpow2.f32 %v2406_v36 }
 0xbb8   : > { %v2404_v21 = vmul.f32 1.442695, %v2392_v43 }
 0xbb9   : > { %v2384_v50 = vpop.xlane.xlu0 %2383 }
 0xbba   : > { %3510 = vpow2.f32 %v2404_v21  ;;  %v2394_v29 = vsub.f32 %v2358_v60, %v2384_v50  ;;  %v2387_v60 = vpop.xlane.xlu1 %2386 }
 0xbbb   : > { %v2395_v61 = vsub.f32 %v4394_v63, %v2387_v60 }
 0xbbc   : > { %v4408_v52 = vpop.eup %3504  ;;  %v2408_v54 = vmul.f32 1.442695, %v2394_v29 }
 0xbbd   : > { %v2418_v28 = vsel %vm812_vm3, %v4408_v52, 0.0  ;;  %v2410_v62 = vmul.f32 1.442695, %v2395_v61 }
 0xbbe   : > { %3512 = vpow2.f32 %v2408_v54  ;;  %2419 = vadd.xlane.f32.xlu0 %v2418_v28  ;;  %v3387_v54 = vld [vmem:[%s4591_s6 + $0x8] sm:$0xff]  }
 0xbbf   : > { %3514 = vpow2.f32 %v2410_v62 }
 0xbc0   : > { %v4412_v53 = vpop.eup %3506 }
 0xbc1   : > { %v2421_v55 = vsel %vm812_vm3, %v4412_v53, 0.0  ;;  %v4416_v56 = vpop.eup %3508 }
 0xbc2   : > { %2422 = vadd.xlane.f32.xlu1 %v2421_v55  ;;  %v2427_v49 = vsel %vm812_vm3, %v4416_v56, 0.0 }
 0xbc4   : > { %v4418_v57 = vpop.eup %3510 }
 0xbc5   : > { %v2424_v39 = vsel %vm812_vm3, %v4418_v57, 0.0 }
 0xbc6   : > { %2425 = vadd.xlane.f32.xlu0 %v2424_v39  ;;  %2428 = vadd.xlane.f32.xlu1 %v2427_v49 }
 0xbc8   : > { %v4424_v58 = vpop.eup %3512 }
 0xbc9   : > { %v2430_v59 = vsel %vm812_vm3, %v4424_v58, 0.0 }
 0xbca   : > { %2431 = vadd.xlane.f32.xlu0 %v2430_v59 }
 0xbd7   : > { %2503 = vrot.lane.b32.xlu1 %v4037_v2, %s3709_s15  ;;  %v4442_v2 = vpop.eup %3514 }
 0xbdb   : > { %2550 = vrot.lane.b32.xlu1 %v4045_v13, %s3709_s15 }
 0xbe0   : > { %2456 = vrot.lane.b32.xlu0 %v4039_v3, %s3709_s15  ;;  %v2433_v3 = vsel %vm812_vm3, %v4442_v2, 0.0 }
 0xbe4   : > { %1596 = vrot.lane.b32.xlu0 %v4273_v42, %s3710_s14 }
 0xbe8   : > { %1600 = vrot.lane.b32.xlu0 %v4277_v45, %s3710_s14 }
 0xbec   : > { %2124 = vrot.lane.b32.xlu0 %v4373_v9, %s3711_s26 }
 0xbf0   : > { %2128 = vrot.lane.b32.xlu0 %v4377_v15, %s3711_s26 }
 0xbf4   : > { %1604 = vrot.lane.b32.xlu0 %v4281_v51, %s3710_s14 }
 0xbf8   : > { %1608 = vrot.lane.b32.xlu0 %v4287_v1, %s3710_s14 }
 0xbfc   : > { %2132 = vrot.lane.b32.xlu0 %v4381_v19, %s3711_s26 }
 0xbff   : > { %2434 = vadd.xlane.f32.xlu1 %v2433_v3 }
 0xc00   : > { %2136 = vrot.lane.b32.xlu0 %v4387_v41, %s3711_s26 }
 0xc10   : > { %2597 = vrot.lane.b32.xlu1 %v4043_v12, %s3709_s15  ;;  %s353_s15 = scalar_lea.vmem [#allocation9], %s2938_s24  ;;  %s2999_s24 = sshll.u32 %s3781_s9, 10 }
 0xc11   : > { %s4535_s13 = scalar_lea.hbm %s4593_s8, %s2999_s24  ;;  %s2822_s9 = scalar_lea.sflag [#allocation5], %s3938_s19 }
 0xc14   : > { %1598 = vrot.lane.b32.xlu1 %v4275_v44, %s3710_s14 }
 0xc17   : > { %v2414_v12 = vpop.xlane.xlu0 %2413 }
 0xc18   : > { %1602 = vrot.lane.b32.xlu1 %v4279_v47, %s3710_s14 }
 0xc19   : > { %v2417_v13 = vpop.xlane.xlu1 %2416 }
 0xc1a   : > { %3516 = vrcp.f32 %v2417_v13 }
 0xc1b   : > { %3518 = vrcp.f32 %v2414_v12 }
 0xc1c   : > { %2126 = vrot.lane.b32.xlu1 %v4375_v11, %s3711_s26 }
 0xc20   : > { %2130 = vrot.lane.b32.xlu1 %v4379_v17, %s3711_s26 }
 0xc24   : > { %1606 = vrot.lane.b32.xlu1 %v4283_v38, %s3710_s14  ;;  %v3517_v51 = vpop.eup %3516 }
 0xc25   : > { %v3519_v38 = vpop.eup %3518  ;;  %v2445_v11 = vmul.f32 %v3517_v51, %v4404_v26 }
 0xc26   : > { %v2444_v17 = vmul.f32 %v3519_v38, %v4400_v24 }
 0xc28   : > { %1610 = vrot.lane.b32.xlu1 %v4289_v6, %s3710_s14 }
 0xc2c   : > { %2134 = vrot.lane.b32.xlu1 %v4383_v23, %s3711_s26 }
 0xc30   : > { %2138 = vrot.lane.b32.xlu1 %v4389_v46, %s3711_s26  ;;  %v2452_v46 = vpack.c.bf16 %v2445_v11, %v2444_v17  ;;  %s2836_s26 = sshll.u32 %s353_s15, 4  ;;  %s4538_s26 = int_to_ptr.vmem [resolvable:$true] %s2836_s26 }
 0xc4b   : > { %v2420_v42 = vpop.xlane.xlu0 %2419 }
 0xc4c   : > { %3520 = vrcp.f32 %v2420_v42 }
 0xc4f   : > { %v2423_v44 = vpop.xlane.xlu1 %2422 }
 0xc50   : > { %3522 = vrcp.f32 %v2423_v44 }
 0xc53   : > { %v2426_v45 = vpop.xlane.xlu0 %2425  ;;  %v2429_v47 = vpop.xlane.xlu1 %2428 }
 0xc54   : > { %3524 = vrcp.f32 %v2426_v45 }
 0xc55   : > { %3526 = vrcp.f32 %v2429_v47 }
 0xc56   : > { %v3521_v9 = vpop.eup %3520 }
 0xc57   : > { %v2432_v1 = vpop.xlane.xlu0 %2431  ;;  %v2504_v6 = vpop.permute.xlu1 %2503  ;;  %v2446_v19 = vmul.f32 %v3521_v9, %v4408_v52  ;;  %v3386_v52 = vld [vmem:[%s4591_s6] sm:$0xff]  }
 0xc58   : > { %3263 = vmatpush3.bf16.msra.mxu1 %v2504_v6  ;;  %3528 = vrcp.f32 %v2432_v1 }
 0xc59   : > { %3274 = vmatprep.subr.bf16.mxu1 %v3697_v48 }
 0xc5a   : > { %v3523_v15 = vpop.eup %3522 }
 0xc5b   : > { %v2447_v23 = vmul.f32 %v3523_v15, %v4412_v53  ;;  %v2457_v41 = vpop.permute.xlu0 %2456  ;;  %v2551_v5 = vpop.permute.xlu1 %2550 }
 0xc5c   : > { %3257 = vmatpush3.bf16.msra.mxu0 %v2457_v41 }
 0xc5d   : > { %3268 = vmatprep.subr.bf16.mxu0 %v3697_v48  ;;  %v2453_v63 = vpack.c.bf16 %v2447_v23, %v2446_v19 }
 0xc5e   : > { %v3525_v4 = vpop.eup %3524 }
 0xc5f   : > { %v3527_v0 = vpop.eup %3526  ;;  %v1597_v7 = vpop.permute.xlu0 %1596  ;;  %3259 = vmatmul.mubr.msk.bf16.vlgmr.msra.gmra.mrb[56].mxu0 %vm812_vm3, %v2452_v46  ;;  %3265 = vmatmul.mubr.msk.bf16.vlgmr.msra.gmra.mrb[64].mxu1 %vm812_vm3, %v2453_v63  ;;  %v2448_v8 = vmul.f32 %v3525_v4, %v4418_v57 }
 0xc60   : > { %1621 = vst.msk [vmem:[#allocation2] sm:$0xff] %vm1620_vm4, %v1597_v7  ;;  %3269 = vmatpush3.bf16.msra.mxu0 %v2551_v5  ;;  %3270 = vmatprep.mubr.msk.bf16.mxu0 %vm3698_vm1, %v3697_v48  ;;  %v2449_v10 = vmul.f32 %v3527_v0, %v4416_v56  ;;  %v2983_v7 = vld [vmem:[%s4592_s7] ss:$0 sm:$0xff] }
 0xc61   : > { %3276 = vmatprep.mubr.msk.bf16.mxu1 %vm3698_vm1, %v3697_v48  ;;  %3280 = vmatprep.subr.bf16.mxu0 %v3386_v52 }
 0xc62   : > { %v2454_v16 = vpack.c.bf16 %v2449_v10, %v2448_v8  ;;  %v3529_v31 = vpop.eup %3528  ;;  %v2799_v10 = vld [vmem:[%s3944_s22 + $0x10] sm:$0xff] }
 0xc63   : > { %v1601_v14 = vpop.permute.xlu0 %1600  ;;  %v2450_v32 = vmul.f32 %v3529_v31, %v4424_v58 }
 0xc64   : > { %1623 = vst.msk [vmem:[#allocation2 + $0x10] sm:$0xff] %vm1620_vm4, %v1601_v14 }
 0xc67   : > { %v2125_v18 = vpop.permute.xlu0 %2124  ;;  %3271 = vmatmul.mubr.msk.bf16.vlgmr.msra.gmra.mrb[60].mxu0 %vm812_vm3, %v2454_v16 }
 0xc68   : > { %2149 = vst.msk [vmem:[#allocation2] sm:$0xff] %vm2148_vm5, %v2125_v18  ;;  %3281 = vmatpush3.bf16.msra.mxu0 %v3386_v52  ;;  %v2797_v18 = vld [vmem:[%s3944_s22] sm:$0xff] }
 0xc69   : > { %3282 = vmatprep.subr.bf16.mxu0 %v3387_v54 }
 0xc6b   : > { %v2129_v22 = vpop.permute.xlu0 %2128 }
 0xc6c   : > { %2151 = vst.msk [vmem:[#allocation2 + $0x10] sm:$0xff] %vm2148_vm5, %v2129_v22  ;;  %3283 = vmatpush3.bf16.msra.mxu0 %v3387_v54 }
 0xc6f   : > { %v1605_v24 = vpop.permute.xlu0 %1604 }
 0xc70   : > { %1625 = vst.msk [vmem:[#allocation2 + $0x20] sm:$0xff] %vm1620_vm4, %v1605_v24 }
 0xc73   : > { %v1609_v25 = vpop.permute.xlu0 %1608 }
 0xc74   : > { %1627 = vst.msk [vmem:[#allocation2 + $0x30] sm:$0xff] %vm1620_vm4, %v1609_v25  ;;  %v2800_v25 = vld [vmem:[%s3944_s22 + $0x18] sm:$0xff] }
 0xc77   : > { %v2133_v48 = vpop.permute.xlu0 %2132 }
 0xc78   : > { %2153 = vst.msk [vmem:[#allocation2 + $0x20] sm:$0xff] %vm2148_vm5, %v2133_v48 }
 0xc7b   : > { %v2137_v26 = vpop.permute.xlu0 %2136 }
 0xc7c   : > { %2155 = vst.msk [vmem:[#allocation2 + $0x30] sm:$0xff] %vm2148_vm5, %v2137_v26 }
 0xc8c   : > { %v2435_v27 = vpop.xlane.xlu1 %2434 }
 0xc8d   : > { %3530 = vrcp.f32 %v2435_v27 }
 0xc90   : > { %v2598_v30 = vpop.permute.xlu1 %2597 }
 0xc91   : > { %3275 = vmatpush3.bf16.msra.mxu1 %v2598_v30  ;;  %v2798_v30 = vld [vmem:[%s3944_s22 + $0x8] sm:$0xff] }
 0xc94   : > { %v1599_v20 = vpop.permute.xlu1 %1598 }
 0xc95   : > { %1622 = vst.msk [vmem:[#allocation2 + $0x8] sm:$0xff] %vm1620_vm4, %v1599_v20 }
 0xc97   : > { %v3531_v33 = vpop.eup %3530 }
 0xc98   : > { %v2451_v34 = vmul.f32 %v3531_v33, %v4442_v2  ;;  %v1603_v35 = vpop.permute.xlu1 %1602 }
 0xc99   : > { %1624 = vst.msk [vmem:[#allocation2 + $0x18] sm:$0xff] %vm1620_vm4, %v1603_v35  ;;  %v2803_v35 = vld [vmem:[%s3944_s22 + $0x30] sm:$0xff] }
 0xc9a   : > { %v2455_v36 = vpack.c.bf16 %v2451_v34, %v2450_v32 }
 0xc9c   : > { %3277 = vmatmul.mubr.msk.bf16.vlgmr.msra.gmra.mrb[68].mxu1 %vm812_vm3, %v2455_v36  ;;  %v2127_v37 = vpop.permute.xlu1 %2126 }
 0xc9d   : > { %2150 = vst.msk [vmem:[#allocation2 + $0x8] sm:$0xff] %vm2148_vm5, %v2127_v37 }
 0xca0   : > { %v2131_v40 = vpop.permute.xlu1 %2130 }
 0xca1   : > { %2152 = vst.msk [vmem:[#allocation2 + $0x18] sm:$0xff] %vm2148_vm5, %v2131_v40  ;;  %v2801_v40 = vld [vmem:[%s3944_s22 + $0x20] sm:$0xff] }
 0xca4   : > { %v1607_v43 = vpop.permute.xlu1 %1606 }
 0xca5   : > { %1626 = vst.msk [vmem:[#allocation2 + $0x28] sm:$0xff] %vm1620_vm4, %v1607_v43 }
 0xca8   : > { %v1611_v21 = vpop.permute.xlu1 %1610 }
 0xca9   : > { %1628 = vst.msk [vmem:[#allocation2 + $0x38] sm:$0xff] %vm1620_vm4, %v1611_v21 }
 0xcac   : > { %v2135_v50 = vpop.permute.xlu1 %2134 }
 0xcad   : > { %2154 = vst.msk [vmem:[#allocation2 + $0x28] sm:$0xff] %vm2148_vm5, %v2135_v50  ;;  %v2804_v50 = vld [vmem:[%s3944_s22 + $0x38] sm:$0xff] }
 0xcb0   : > { %v2139_v29 = vpop.permute.xlu1 %2138 }
 0xcb1   : > { %2156 = vst.msk [vmem:[#allocation2 + $0x38] sm:$0xff] %vm2148_vm5, %v2139_v29 }
 0xd32   : > { %v2496_v28 = vpop.f32.mrb[56].mxu0  ;;  %v2543_v53 = vpop.f32.mrb[64].mxu1 }
 0xd33   : > { %2652 = vrot.lane.b32.xlu0 %v2496_v28, %s3712_s17  ;;  %v3260_v55 = vpop.f32.mrb[57].mxu0  ;;  %v3266_v56 = vpop.f32.mrb[65].mxu1  ;;  %v2802_v28 = vld [vmem:[%s3944_s22 + $0x28] sm:$0xff]  ;;  %s3618_s22 = scalar_lea.vmem %s4538_s26, 1024 }
 0xd34   : > { %v2499_v57 = vpop.f32.mrb[58].mxu0  ;;  %v2546_v39 = vpop.f32.mrb[66].mxu1  ;;  %p3619_p11 = scmp.ne.s32.totalorder %s4538_s26, %s3618_s22 }
 0xd35   : > { %2654 = vrot.lane.b32.xlu1 %v2499_v57, %s3712_s17  ;;  %v3261_v49 = vpop.f32.mrb[59].mxu0  ;;  %v3267_v58 = vpop.f32.mrb[67].mxu1 }
 0xd36   : > { %p3620_p1 = pnand %p3619_p11, %p4611_p0 }
 0xd37   : > { %2656 = vrot.lane.b32.xlu0 %v2543_v53, %s3712_s17 }
 0xd38   : > { %p3621_p3 = pneg %p3620_p1 }
 0xd39   : > { %2658 = vrot.lane.b32.xlu1 %v2546_v39, %s3712_s17 }
 0xd3a   : > { %v2590_v59 = vpop.f32.mrb[60].mxu0 }
 0xd3b   : > { %v3272_v60 = vpop.f32.mrb[61].mxu0  ;;  %2660 = vrot.lane.b32.xlu0 %v2590_v59, %s3712_s17 }
 0xd3c   : > { %v2593_v61 = vpop.f32.mrb[62].mxu0 }
 0xd3d   : > { %v3273_v62 = vpop.f32.mrb[63].mxu0  ;;  %2662 = vrot.lane.b32.xlu1 %v2593_v61, %s3712_s17 }
 0xd6f   : > { %v2637_v2 = vpop.f32.mrb[68].mxu1 }
 0xd70   : > { %2664 = vrot.lane.b32.xlu0 %v2637_v2, %s3712_s17  ;;  %v3278_v3 = vpop.f32.mrb[69].mxu1 }
 0xd71   : > { %v2640_v12 = vpop.f32.mrb[70].mxu1 }
 0xd72   : > { %2666 = vrot.lane.b32.xlu1 %v2640_v12, %s3712_s17  ;;  %v3279_v13 = vpop.f32.mrb[71].mxu1  ;;  %s3622_s17 = sshll.u32 %s3713_s10, 4  ;;  %s3623_s17 = int_to_ptr.vmem [resolvable:$false] %s3622_s17 }
 0xd73   : > { %s3624_s21 = scalar_lea.vmem %s3623_s17, 2048  ;;  %p3625_p5 = scmp.lt.s32.totalorder %s4538_s26, %s3623_s17 }
 0xd74   : > { %p3626_p9 = scmp.lt.s32.totalorder %s3624_s21, %s3618_s22 }
 0xd76   : > { %p3627_p12 = por %p3626_p9, %p3625_p5 }
 0xd78   : > { %p3628_p2 = pnand %p3627_p12, %p3621_p3 }
 0xda5   : > { %v2653_v42 = vpop.permute.xlu0 %2652 }
 0xda6   : > { %2677 = vst.msk [vmem:[#allocation2] sm:$0xff] %vm2676_vm6, %v2653_v42 }
 0xda7   : > { %v2655_v44 = vpop.permute.xlu1 %2654 }
 0xda8   : > { %2678 = vst.msk [vmem:[#allocation2 + $0x8] sm:$0xff] %vm2676_vm6, %v2655_v44 }
 0xda9   : > { %v2657_v45 = vpop.permute.xlu0 %2656 }
 0xdaa   : > { %2679 = vst.msk [vmem:[#allocation2 + $0x10] sm:$0xff] %vm2676_vm6, %v2657_v45 }
 0xdab   : > { %v2659_v47 = vpop.permute.xlu1 %2658 }
 0xdac   : > { %2680 = vst.msk [vmem:[#allocation2 + $0x18] sm:$0xff] %vm2676_vm6, %v2659_v47 }
 0xdad   : > { %v2661_v51 = vpop.permute.xlu0 %2660  ;;  %v2685_v1 = vld [vmem:[#allocation2] sm:$0xff] }
 0xdae   : > { %2681 = vst.msk [vmem:[#allocation2 + $0x20] sm:$0xff] %vm2676_vm6, %v2661_v51 }
 0xdaf   : > { %v2663_v38 = vpop.permute.xlu1 %2662  ;;  %v2686_v6 = vld [vmem:[#allocation2 + $0x8] sm:$0xff] }
 0xdb0   : > { %2682 = vst.msk [vmem:[#allocation2 + $0x28] sm:$0xff] %vm2676_vm6, %v2663_v38  ;;  %v2693_v9 = vpack.c.bf16 %v2686_v6, %v2685_v1 }
 0xdb1   : > { %v2687_v11 = vld [vmem:[#allocation2 + $0x10] sm:$0xff] }
 0xdb2   : > { %3284 = vmatprep.mubr.msk.bf16.mxu0 %vm365_vm0, %v2693_v9 }
 0xdb3   : > { %v2688_v15 = vld [vmem:[#allocation2 + $0x18] sm:$0xff] }
 0xdb4   : > { %v2694_v17 = vpack.c.bf16 %v2688_v15, %v2687_v11 }
 0xdb5   : > { %v2689_v19 = vld [vmem:[#allocation2 + $0x20] sm:$0xff] }
 0xdb6   : > { %3285 = vmatmul.mubr.msk.bf16.vlgmr.msra.gmra.mrb[64].mxu0 %vm365_vm0, %v2694_v17 }
 0xdb7   : > { %v2690_v23 = vld [vmem:[#allocation2 + $0x28] sm:$0xff] }
 0xdb8   : > { %v2695_v41 = vpack.c.bf16 %v2690_v23, %v2689_v19 }
 0xdba   : > { %3288 = vmatprep.mubr.msk.bf16.mxu0 %vm365_vm0, %v2695_v41 }
 0xde2   : > { %v2665_v46 = vpop.permute.xlu0 %2664 }
 0xde3   : > { %2683 = vst.msk [vmem:[#allocation2 + $0x30] sm:$0xff] %vm2676_vm6, %v2665_v46 }
 0xde4   : > { %v2667_v63 = vpop.permute.xlu1 %2666 }
 0xde5   : > { %2684 = vst.msk [vmem:[#allocation2 + $0x38] sm:$0xff] %vm2676_vm6, %v2667_v63 }
 0xdea   : > { %v2691_v4 = vld [vmem:[#allocation2 + $0x30] sm:$0xff] }
 0xdec   : > { %v2692_v0 = vld [vmem:[#allocation2 + $0x38] sm:$0xff] }
 0xded   : > { %v2696_v5 = vpack.c.bf16 %v2692_v0, %v2691_v4 }
 0xdef   : > { %3289 = vmatmul.mubr.msk.bf16.gmra.mrb[68].mxu0 %vm365_vm0, %v2696_v5 }
 0xe89   : > { %v3286_v8 = vpop.f32.mrb[64].mxu0 }
 0xe8a   : > { %v2775_v14 = vadd.f32 %v3286_v8, %v2983_v7  ;;  %v2766_v16 = vpop.f32.mrb[65].mxu0 }
 0xe8b   : > { %v2767_v22 = vadd.f32 %v2983_v7, %v2766_v16  ;;  %v3287_v24 = vpop.f32.mrb[66].mxu0 }
 0xe8c   : > { %v2807_v48 = vadd.f32 %v2799_v10, %v2775_v14  ;;  %v2778_v26 = vadd.f32 %v3287_v24, %v2983_v7  ;;  %v2769_v27 = vpop.f32.mrb[67].mxu0 }
 0xe8d   : > { %v2805_v20 = vadd.f32 %v2797_v18, %v2767_v22  ;;  %v2770_v31 = vadd.f32 %v2983_v7, %v2769_v27 }
 0xe8e   : > { %2815 = vst.msk [vmem:[%s353_s15 + $0x10] sm:$0xff] %vm365_vm0, %v2807_v48  ;;  %v2808_v33 = vadd.f32 %v2800_v25, %v2778_v26 }
 0xe8f   : > { %2813 = vst.msk [vmem:[%s353_s15] sm:$0xff] %vm365_vm0, %v2805_v20  ;;  %v2806_v32 = vadd.f32 %v2798_v30, %v2770_v31 }
 0xe90   : > { %2816 = vst.msk [vmem:[%s353_s15 + $0x18] sm:$0xff] %vm365_vm0, %v2808_v33 }
 0xe91   : > { %2814 = vst.msk [vmem:[%s353_s15 + $0x8] sm:$0xff] %vm365_vm0, %v2806_v32 }
 0xec2   : > { %v3290_v34 = vpop.f32.mrb[68].mxu0 }
 0xec3   : > { %v2791_v36 = vadd.f32 %v3290_v34, %v2983_v7  ;;  %v2782_v37 = vpop.f32.mrb[69].mxu0 }
 0xec4   : > { %v2783_v43 = vadd.f32 %v2983_v7, %v2782_v37  ;;  %v3291_v21 = vpop.f32.mrb[70].mxu0 }
 0xec5   : > { %v2811_v29 = vadd.f32 %v2803_v35, %v2791_v36  ;;  %v2794_v52 = vadd.f32 %v3291_v21, %v2983_v7  ;;  %v2785_v54 = vpop.f32.mrb[71].mxu0 }
 0xec6   : > { %v2809_v53 = vadd.f32 %v2801_v40, %v2783_v43  ;;  %v2786_v55 = vadd.f32 %v2983_v7, %v2785_v54 }
 0xec7   : > { %2819 = vst.msk [vmem:[%s353_s15 + $0x30] sm:$0xff] %vm365_vm0, %v2811_v29  ;;  %v2812_v56 = vadd.f32 %v2804_v50, %v2794_v52 }
 0xec8   : > { %2817 = vst.msk [vmem:[%s353_s15 + $0x20] sm:$0xff] %vm365_vm0, %v2809_v53  ;;  %v2810_v57 = vadd.f32 %v2802_v28, %v2786_v55 }
 0xec9   : > { %2820 = vst.msk [vmem:[%s353_s15 + $0x38] sm:$0xff] %vm365_vm0, %v2812_v56 }
 0xeca   : > { %2818 = vst.msk [vmem:[%s353_s15 + $0x28] sm:$0xff] %vm365_vm0, %v2810_v57 }
 0xecb   : > { %3631 = shalt.err (!%p3628_p2)
}
 0xecc   : > { %s3632_s18 = scalar_lea.hbm %s4535_s13, 1024  ;;  %s3636_s25 = scalar_lea.hbm %s4593_s8, 2048 }
 0xecd   : > { %p3633_p13 = scmp.ne.s32.totalorder %s4535_s13, %s3632_s18  ;;  %p3637_p4 = scmp.lt.u32.totalorder %s4535_s13, %s4593_s8 }
 0xece   : > { %p3638_p7 = scmp.lt.u32.totalorder %s3636_s25, %s3632_s18  ;;  %p3640_p11 = scmp.lt.u32.totalorder %s3632_s18, %s4535_s13 }
 0xecf   : > { %p3634_p6 = pnand %p3633_p13, %p4611_p0 }
 0xed0   : > { %p3639_p8 = por %p3638_p7, %p3637_p4 }
 0xed1   : > { %p3635_p10 = pneg %p3634_p6 }
 0xed2   : > { %p3641_p1 = por %p3640_p11, %p3639_p8 }
 0xed4   : > { %p3642_p3 = pnand %p3641_p1, %p3635_p10 }
 0xed6   : > { %3645 = shalt.err (!%p3642_p3)
}
 0xed7   : > { %s3714_s22 = smov 128  }
 0xed8   : > { %3306 = dma.vmem_to_hbm [thread:$0]  (%p4611_p0), %s4538_s26, 1024, %s4535_s13, %s2822_s9, %s3714_s22, %s3714_s22, %s3710_s14  }
 0xed9 PF: > { %s2851_s17 = sand.u32 1, %s3676_s27   ;;  %p4612_p5 = scmp.ne.s32.totalorder %s4600_s12, 0 }
 0xeda   : > { %p4613_p9 = scmp.ge.s32.totalorder %s3688_s30, 2  ;;  %s2852_s21 = scalar_lea.sflag [#allocation5], %s2851_s17 }
 0xedc   : > { %p3320_p12 = pnand %p4613_p9, %p4612_p5 }
 0xede   : > { %3671 = dma.done.wait (!%p3320_p12), %s2852_s21, 1024  }
 0xedf   : > { %3673 = vsyncadd (!%p3320_p12), %s2852_s21, 4294966272  ;;  %p22_p2 = scmp.ge.s32.totalorder %s3873_s20, 4   ;;  %s4614_s27 = smov %s3680_s28 }
 0xee0   : > { %s4615_s28 = smov %s3684_s29  ;;  %s4616_s29 = smov %s3882_s23 }
 0xee1   : > { %s4617_s30 = smov %s3873_s20  ;;  %24 = sbr.rel (!%p22_p2) target bundleno = 6 (0x6), region = 108 }
 0xee8   :  { %2857 = vsyncpa [#allocation4], 1 }
 0xee9   :  { %2859 = vsyncpa [#allocation4 + $0x1], 1 }
 0xeea   :  { %2860 = vsyncpa [#allocation7], 1 }
 0xeeb   :  { %2861 = vsyncpa [#allocation5], 1 }
 0xeec   :  { %2863 = vsyncpa [#allocation5 + $0x1], 1 }

</bundles_post_ra>
